<compile_context>
chip_gen: v6e
topology: v6e:2x2x1
jax: 0.10.0
libtpu: 0.0.40
codegen_flags: <defaults>
</compile_context>

<pallas_src>
import jax
import jax.numpy as jnp
from jax.experimental import pallas as pl
from jax.experimental.pallas import tpu as pltpu

# Logical (PyTorch) layer sizes and their packed / lane-padded TPU sizes.
H1, H2, H3 = 400, 300, 300
H12 = H1 + H2            # 700 : fused fc1|fc2 output width (no interior pad)
H12P = 768               # 700 -> 768 (tail lane-pad only)
H3P = 384                # 300 -> 384
ONE_COL_ZA = H12         # za pad column carrying the constant 1 (b3 fold)
ONE_COL_H = H3           # h  pad column carrying the constant 1 (b4 fold)


def _cdiv(a, b):
    return -(-a // b)


def _round_up(a, m):
    return _cdiv(a, m) * m


def critic_kernel(xa_ref, w12_ref, w3_ref, w4_ref, out_ref):
    # za = relu([x|a|1] @ W12)   (fc1/fc2 fused block-diagonally; b1/b2 folded
    #                             into the W12 row fed by the constant-1 column)
    za = jnp.dot(xa_ref[...], w12_ref[...], preferred_element_type=jnp.float32)
    za = jnp.maximum(za, 0.0)

    # h = relu(za @ W3)          (torch.cat is implicit in the packed W3 rows;
    #                             b3 folded via za's constant-1 pad column)
    h = jnp.dot(za.astype(w3_ref.dtype), w3_ref[...],
                preferred_element_type=jnp.float32)
    h = jnp.maximum(h, 0.0)

    # q = h @ w4 (+ b4 folded into lane ONE_COL_H): VPU multiply + XLU lane
    # reduction instead of an N=1 MXU pass; stored as a narrow (TB, 1) column.
    out_ref[...] = jnp.sum(h * w4_ref[...], axis=-1, keepdims=True)


def init_params(key, state_dim, action_dim):
    """PyTorch nn.Linear default init (U[-1/sqrt(fan_in), +1/sqrt(fan_in)])."""
    def linear(k, fan_in, fan_out):
        kw, kb = jax.random.split(k)
        bound = 1.0 / jnp.sqrt(fan_in)
        w = jax.random.uniform(kw, (fan_in, fan_out), jnp.float32, -bound, bound)
        b = jax.random.uniform(kb, (fan_out,), jnp.float32, -bound, bound)
        return w, b

    k1, k2, k3, k4 = jax.random.split(key, 4)
    w1, b1 = linear(k1, state_dim, H1)
    w2, b2 = linear(k2, action_dim, H2)
    w3, b3 = linear(k3, H1 + H2, H3)
    w4, b4 = linear(k4, H3, 1)
    return dict(w1=w1, b1=b1, w2=w2, b2=b2, w3=w3, b3=b3, w4=w4, b4=b4)


def pack_params(raw, state_dim, action_dim, *, compute_dtype=jnp.bfloat16):
    """Pack raw params into the padded, bias-folded, block-diagonal layout."""
    din = state_dim + action_dim
    # +1 feature column holds the constant 1.0 that drives the bias folds.
    din_pad = max(128, _round_up(din + 1, 128))
    ones_row = din  # W12 row multiplied by the constant-1 input column

    # fc1/fc2 as one block-diagonal weight, packed densely (no interior pad).
    w12 = jnp.zeros((din_pad, H12P), jnp.float32)
    w12 = w12.at[:state_dim, :H1].set(raw["w1"])
    w12 = w12.at[state_dim:din, H1:H12].set(raw["w2"])
    w12 = w12.at[ones_row, :H1].set(raw["b1"])          # fold b1
    w12 = w12.at[ones_row, H1:H12].set(raw["b2"])       # fold b2
    w12 = w12.at[ones_row, ONE_COL_ZA].set(1.0)         # constant 1 -> za pad col

    # fc3; rows match the packed [fc1_out | fc2_out] za layout directly.
    w3 = jnp.zeros((H12P, H3P), jnp.float32)
    w3 = w3.at[:H12, :H3].set(raw["w3"])
    w3 = w3.at[ONE_COL_ZA, :H3].set(raw["b3"])          # fold b3
    w3 = w3.at[ONE_COL_ZA, ONE_COL_H].set(1.0)          # constant 1 -> h pad col

    # Output layer as a (1, H3P) f32 row (VPU reduce, not MXU); b4 folded.
    w4 = jnp.zeros((1, H3P), jnp.float32)
    w4 = w4.at[0, :H3].set(raw["w4"][:, 0])
    w4 = w4.at[0, ONE_COL_H].set(raw["b4"][0])          # fold b4

    return dict(din_pad=din_pad, compute_dtype=compute_dtype,
                w12=w12.astype(compute_dtype),
                w3=w3.astype(compute_dtype),
                w4=w4)


def critic_forward(x, a, packed, *, tb=None):
    B = x.shape[0]
    din = x.shape[1] + a.shape[1]
    din_pad = packed["din_pad"]
    dtype = packed["compute_dtype"]

    if tb is None:
        b128 = max(128, _round_up(B, 128))
        if b128 >= 256:
            # Even number of grid steps (>= 2) so both v7x TensorCores get
            # work; tiles capped at 1024 rows (footprint is only a few MiB).
            n_steps = max(2, 2 * _cdiv(b128, 2048))
            tb = _round_up(_cdiv(b128, n_steps), 128)
        else:
            tb = b128
    grid = _cdiv(B, tb)
    b_pad = grid * tb

    # [x | a | 1], zero-pad batch & feature dims, cast to bf16.  The trailing
    # 1.0 column drives the folded biases; padded batch rows get 0 there, so
    # they propagate exact zeros through the whole network.
    xa = jnp.concatenate([x, a, jnp.ones((B, 1), x.dtype)], axis=1)
    xa = jnp.pad(xa, ((0, b_pad - B), (0, din_pad - (din + 1)))).astype(dtype)

    out = pl.pallas_call(
        critic_kernel,
        out_shape=jax.ShapeDtypeStruct((b_pad, 1), jnp.float32),
        grid_spec=pltpu.PrefetchScalarGridSpec(
            num_scalar_prefetch=0,
            grid=(grid,),
            in_specs=[
                pl.BlockSpec((tb, din_pad), lambda i: (i, 0)),    # [x|a|1] tile
                pl.BlockSpec((din_pad, H12P), lambda i: (0, 0)),  # W12 (resident)
                pl.BlockSpec((H12P, H3P), lambda i: (0, 0)),      # W3  (resident)
                pl.BlockSpec((1, H3P), lambda i: (0, 0)),         # w4 row (f32)
            ],
            out_specs=pl.BlockSpec((tb, 1), lambda i: (i, 0)),
        ),
        compiler_params=pltpu.CompilerParams(
            # Megacore-shard the batch axis on v7x; raise scoped VMEM so larger
            # tiles fit under the v5e/v7x default scoped-VMEM limits.
            dimension_semantics=("parallel",),
            vmem_limit_bytes=32 * 1024 * 1024),
    )(xa, packed["w12"], packed["w3"], packed["w4"])

    # Narrow (b_pad, 1) result -> the logical (B, 1) output.
    return out[:B]


def reference_forward(x, a, raw):
    xs = jax.nn.relu(x @ raw["w1"] + raw["b1"])
    xa = jax.nn.relu(a @ raw["w2"] + raw["b2"])
    h = jnp.concatenate([xs, xa], axis=1)
    h = jax.nn.relu(h @ raw["w3"] + raw["b3"])
    return h @ raw["w4"] + raw["b4"]


if __name__ == "__main__":
    batch, state_dim, action_dim = 2, 16, 8

    key = jax.random.PRNGKey(0)
    kx, ka, kp = jax.random.split(key, 3)
    x = jax.random.normal(kx, (batch, state_dim), jnp.float32)
    a = jax.random.normal(ka, (batch, action_dim), jnp.float32)

    raw = init_params(kp, state_dim, action_dim)
    packed = pack_params(raw, state_dim, action_dim)

    q = critic_forward(x, a, packed)
    jax.block_until_ready(q)

    q_ref = reference_forward(x, a, raw)
    assert q.shape == (batch, 1), q.shape
    # bf16 weights/activations (biases bf16 via the fold) with f32 accumulation
    # -> relaxed tolerance.
    assert jnp.allclose(q, q_ref, atol=5e-2, rtol=5e-2), (
        float(jnp.max(jnp.abs(q - q_ref))))

    print("KERNEL_OK")
</pallas_src>

<mosaic_0001>
module attributes {stable_mosaic.version = 11 : i64} {
  func.func @critic_kernel(%arg0: i32, %arg1: memref<128x128xbf16, #tpu.memory_space<vmem>>, %arg2: memref<128x768xbf16, #tpu.memory_space<vmem>>, %arg3: memref<768x384xbf16, #tpu.memory_space<vmem>>, %arg4: memref<1x384xf32, #tpu.memory_space<vmem>>, %arg5: memref<128x1xf32, #tpu.memory_space<vmem>>) attributes {dimension_semantics = [#tpu.dimension_semantics<parallel>], iteration_bounds = array<i64: 1>, scalar_prefetch = 0 : i64, scratch_operands = 0 : i64, tpu.core_type = #tpu.core_type<tc>, window_params = [{transform_indices = @transform_0, window_bounds = array<i64: 128, 128>}, {pipeline_mode = #tpu.pipeline_mode<synchronous>, transform_indices = @transform_1, window_bounds = array<i64: 128, 768>}, {pipeline_mode = #tpu.pipeline_mode<synchronous>, transform_indices = @transform_2, window_bounds = array<i64: 768, 384>}, {pipeline_mode = #tpu.pipeline_mode<synchronous>, transform_indices = @transform_3, window_bounds = array<i64: 1, 384>}, {transform_indices = @transform_4, window_bounds = array<i64: 128, 1>}]} {
    %c0 = arith.constant 0 : index
    %c0_0 = arith.constant 0 : index
    %0 = vector.load %arg1[%c0, %c0_0] : memref<128x128xbf16, #tpu.memory_space<vmem>>, vector<128x128xbf16>
    %c0_1 = arith.constant 0 : index
    %c0_2 = arith.constant 0 : index
    %1 = vector.load %arg2[%c0_1, %c0_2] : memref<128x768xbf16, #tpu.memory_space<vmem>>, vector<128x768xbf16>
    %cst = arith.constant dense<0.000000e+00> : vector<128x768xf32>
    %2 = tpu.matmul %0, %1, %cst {dimension_numbers = #tpu.dot_dimension_numbers<[1], [0], [0], [1], [0, 0, 1, 1], [], []>} : vector<128x128xbf16>, vector<128x768xbf16>, vector<128x768xf32> -> vector<128x768xf32>
    %cst_3 = arith.constant 0.000000e+00 : f32
    %3 = vector.broadcast %cst_3 : f32 to vector<128x768xf32>
    %4 = arith.maximumf %2, %3 : vector<128x768xf32>
    %5 = arith.truncf %4 : vector<128x768xf32> to vector<128x768xbf16>
    %c0_4 = arith.constant 0 : index
    %c0_5 = arith.constant 0 : index
    %6 = vector.load %arg3[%c0_4, %c0_5] : memref<768x384xbf16, #tpu.memory_space<vmem>>, vector<768x384xbf16>
    %cst_6 = arith.constant dense<0.000000e+00> : vector<128x384xf32>
    %7 = tpu.matmul %5, %6, %cst_6 {dimension_numbers = #tpu.dot_dimension_numbers<[1], [0], [0], [1], [0, 0, 1, 1], [], []>} : vector<128x768xbf16>, vector<768x384xbf16>, vector<128x384xf32> -> vector<128x384xf32>
    %cst_7 = arith.constant 0.000000e+00 : f32
    %8 = vector.broadcast %cst_7 : f32 to vector<128x384xf32>
    %9 = arith.maximumf %7, %8 : vector<128x384xf32>
    %c0_8 = arith.constant 0 : index
    %c0_9 = arith.constant 0 : index
    %10 = vector.load %arg4[%c0_8, %c0_9] : memref<1x384xf32, #tpu.memory_space<vmem>>, vector<1x384xf32>
    %11 = vector.broadcast %10 : vector<1x384xf32> to vector<128x384xf32>
    %12 = arith.mulf %9, %11 : vector<128x384xf32>
    %cst_10 = arith.constant dense<0.000000e+00> : vector<128xf32>
    %13 = vector.multi_reduction <add>, %12, %cst_10 [1] : vector<128x384xf32> to vector<128xf32>
    %14 = vector.shape_cast %13 : vector<128xf32> to vector<128x1xf32>
    %c0_11 = arith.constant 0 : index
    %c0_12 = arith.constant 0 : index
    %15 = vector.load %arg5[%c0_11, %c0_12] : memref<128x1xf32, #tpu.memory_space<vmem>>, vector<128x1xf32>
    tpu.vector_store %arg5[%c0_11, %c0_12], %14 {strides = array<i32>} : memref<128x1xf32, #tpu.memory_space<vmem>>, vector<128x1xf32>,
    return
  }
  func.func @transform_0(%arg0: i32) -> (i32, i32) {
    %c0_i32 = arith.constant 0 : i32
    %c0_i32_0 = arith.constant 0 : i32
    return %arg0, %c0_i32 : i32, i32
  }
  func.func @transform_1(%arg0: i32) -> (i32, i32) {
    %c0_i32 = arith.constant 0 : i32
    %c0_i32_0 = arith.constant 0 : i32
    %c0_i32_1 = arith.constant 0 : i32
    return %c0_i32, %c0_i32_0 : i32, i32
  }
  func.func @transform_2(%arg0: i32) -> (i32, i32) {
    %c0_i32 = arith.constant 0 : i32
    %c0_i32_0 = arith.constant 0 : i32
    %c0_i32_1 = arith.constant 0 : i32
    return %c0_i32, %c0_i32_0 : i32, i32
  }
  func.func @transform_3(%arg0: i32) -> (i32, i32) {
    %c0_i32 = arith.constant 0 : i32
    %c0_i32_0 = arith.constant 0 : i32
    %c0_i32_1 = arith.constant 0 : i32
    return %c0_i32, %c0_i32_0 : i32, i32
  }
  func.func @transform_4(%arg0: i32) -> (i32, i32) {
    %c0_i32 = arith.constant 0 : i32
    %c0_i32_0 = arith.constant 0 : i32
    return %arg0, %c0_i32 : i32, i32
  }
}

</mosaic_0001>

<bundles_post_ra>
// kernel: tpu_custom_call.1
= control target key start
LH: loop header
LB: loop body
LE: loop exit
PB: predicated region body
PF: predicated region fallthrough
CT: control target
= control target key end

     0   :  { %9 = vsyncpa [#allocation3], 0  ;;  %s4294_s0 = inlined_call_operand.hbm [shape: bf16[128,128], index: 0, kind: input, shape index: {}]   ;;  %s4295_s1 = inlined_call_operand.hbm [shape: bf16[128,768], index: 1, kind: input, shape index: {}]   ;;  %s4296_s2 = inlined_call_operand.hbm [shape: bf16[768,384], index: 2, kind: input, shape index: {}]   ;;  %s4297_s3 = inlined_call_operand.vmem [shape: f32[1,384], index: 3, kind: input, shape index: {}]   ;;  %s4298_s4 = inlined_call_operand.vmem [shape: f32[128,1], index: 4, kind: output, shape index: {}]  }
   0x1   :  { %10 = vsyncpa [#allocation5], 0  ;;  %s3438_s15 = smov [#allocation4]  }
   0x2   :  { %s28_s16 = sshll.u32 %s3438_s15, 4  ;;  %s29_s16 = int_to_ptr.vmem [resolvable:$true] %s28_s16 }
   0x3   :  { %s3382_s17 = scalar_lea.vmem %s29_s16, 6144  ;;  %p3387_p1 = scmp.lt.s32.totalorder %s29_s16, %s29_s16 }
   0x4   :  { %p3383_p0 = scmp.ne.s32.totalorder %s29_s16, %s3382_s17  ;;  %p3388_p2 = scmp.lt.s32.totalorder %s3382_s17, %s3382_s17 }
   0x6   :  { %p3389_p3 = por %p3388_p2, %p3387_p1 }
   0x8   :  { %p3390_p4 = pnand %p3389_p3, %p3383_p0 }
   0xa   :  { %3393 = shalt.err (!%p3390_p4)
}
   0xb   :  { %s3439_s18 = smov 384   ;;  %s3440_s19 = smov 24  }
   0xc   :  { %34 = dma.hbm_to_vmem [thread:$0]  %s4295_s1, 6144, %s29_s16, [#allocation5], %s3439_s18, %s3439_s18, %s3440_s19  }
   0xd   :  { %s3441_s22 = smov [#allocation2]  }
   0xe   :  { %s16_s23 = sshll.u32 %s3441_s22, 4  ;;  %s17_s23 = int_to_ptr.vmem [resolvable:$true] %s16_s23 }
   0xf   :  { %s3402_s24 = scalar_lea.vmem %s17_s23, 1024  ;;  %p3407_p6 = scmp.lt.s32.totalorder %s17_s23, %s17_s23 }
  0x10   :  { %p3403_p5 = scmp.ne.s32.totalorder %s17_s23, %s3402_s24  ;;  %p3408_p7 = scmp.lt.s32.totalorder %s3402_s24, %s3402_s24 }
  0x12   :  { %p3409_p8 = por %p3408_p7, %p3407_p6 }
  0x14   :  { %p3410_p9 = pnand %p3409_p8, %p3403_p5 }
  0x16   :  { %3413 = shalt.err (!%p3410_p9)
}
  0x17   :  { %s3442_s25 = smov 64   ;;  %s3443_s26 = smov 4  }
  0x18   :  { %22 = dma.hbm_to_vmem [thread:$0]  %s4294_s0, 1024, %s17_s23, [#allocation3], %s3442_s25, %s3442_s25, %s3443_s26  }
  0x19   :  { %s3444_s29 = smov [#allocation6]  }
  0x1a   :  { %s40_s30 = sshll.u32 %s3444_s29, 4  ;;  %s41_s30 = int_to_ptr.vmem [resolvable:$true] %s40_s30 }
  0x1b   :  { %s3422_s1 = scalar_lea.vmem %s41_s30, 18432  ;;  %p3427_p11 = scmp.lt.s32.totalorder %s41_s30, %s41_s30 }
  0x1c   :  { %p3423_p10 = scmp.ne.s32.totalorder %s41_s30, %s3422_s1  ;;  %p3428_p12 = scmp.lt.s32.totalorder %s3422_s1, %s3422_s1 }
  0x1e   :  { %p3429_p13 = por %p3428_p12, %p3427_p11 }
  0x20   :  { %p3430_p0 = pnand %p3429_p13, %p3423_p10 }
  0x22   :  { %3433 = shalt.err (!%p3430_p0)
}
  0x23   :  { %s3445_s5 = smov 192   ;;  %s3446_s6 = smov 12  }
  0x24   :  { %46 = dma.hbm_to_vmem [thread:$0]  %s4296_s2, 18432, %s41_s30, [#allocation5], %s3445_s5, %s3445_s5, %s3446_s6  }
  0x25   :  { %3434 = dma.done.wait [#allocation3], 1024  }
  0x26   :  { %3435 = vsyncadd [#allocation3], 4294966272 }
  0x27   :  { %3436 = dma.done.wait [#allocation5], 24576  }
  0x28   :  { %3437 = vsyncadd [#allocation5], 4294942720  ;;  %v3447_v0 = vmov 0   ;;  %v3102_v1 = vld [vmem:[#allocation4 + $0x154] ss:$24 sps:$4 sm:$0xff]   ;;  %v3484_v18 = vld [vmem:[#allocation2] sm:$0xff]  }
  0x29   :  { %443 = vmatprep.mubr.bf16.mxu0 %v3447_v0  ;;  %483 = vmatprep.mubr.bf16.mxu1 %v3447_v0  ;;  %v3104_v2 = vld [vmem:[#allocation4 + $0x150] ss:$24 sps:$4 sm:$0xff]   ;;  %v3105_v3 = vld [vmem:[#allocation4 + $0x124] ss:$24 sps:$4 sm:$0xff]   ;;  %v3107_v4 = vld [vmem:[#allocation4 + $0x120] ss:$24 sps:$4 sm:$0xff]  }
  0x2a   :  { %411 = vmatprep.subr.bf16.mxu0 %v3102_v1  ;;  %3076 = vmatprep.subr.bf16.mxu1 %v3102_v1  ;;  %v3108_v5 = vld [vmem:[#allocation4 + $0xf4] ss:$24 sps:$4 sm:$0xff]   ;;  %v3110_v6 = vld [vmem:[#allocation4 + $0xf0] ss:$24 sps:$4 sm:$0xff]   ;;  %v3111_v7 = vld [vmem:[#allocation4 + $0xc4] ss:$24 sps:$4 sm:$0xff]  }
  0x2b   :  { %412 = vmatpush1.bf16.msra.mxu0 %v3104_v2  ;;  %3084 = vmatpush1.bf16.msra.mxu1 %v3104_v2  ;;  %v3113_v8 = vld [vmem:[#allocation4 + $0xc0] ss:$24 sps:$4 sm:$0xff]   ;;  %v3114_v9 = vld [vmem:[#allocation4 + $0x94] ss:$24 sps:$4 sm:$0xff]   ;;  %v3116_v10 = vld [vmem:[#allocation4 + $0x90] ss:$24 sps:$4 sm:$0xff]  }
  0x2c   :  { %413 = vmatprep.subr.bf16.mxu0 %v3105_v3  ;;  %3077 = vmatprep.subr.bf16.mxu1 %v3105_v3  ;;  %v3117_v11 = vld [vmem:[#allocation4 + $0x64] ss:$24 sps:$4 sm:$0xff]   ;;  %v3119_v12 = vld [vmem:[#allocation4 + $0x60] ss:$24 sps:$4 sm:$0xff]   ;;  %v3120_v13 = vld [vmem:[#allocation4 + $0x34] ss:$24 sps:$4 sm:$0xff]  }
  0x2d   :  { %v3122_v14 = vld [vmem:[#allocation4 + $0x30] ss:$24 sps:$4 sm:$0xff]   ;;  %v3123_v15 = vld [vmem:[#allocation4 + $0x4] ss:$24 sps:$4 sm:$0xff]   ;;  %v3125_v16 = vld [vmem:[#allocation4] ss:$24 sps:$4 sm:$0xff]  }
  0x2e   :  { %v3130_v17 = vld [vmem:[#allocation4 + $0x15c] ss:$24 sps:$4 sm:$0xff]   ;;  %v3486_v19 = vld [vmem:[#allocation2 + $0x20] sm:$0xff]   ;;  %v3128_v21 = vld [vmem:[#allocation4 + $0x158] ss:$24 sps:$4 sm:$0xff]   ;;  %vm2661_vm0 = vcmask 7168  }
  0x2f   :  { %414 = vmatpush1.bf16.msra.mxu0 %v3107_v4  ;;  %3085 = vmatpush1.bf16.msra.mxu1 %v3107_v4  ;;  %v3160_v20 = vld [vmem:[#allocation4 + $0x164] ss:$24 sps:$4 sm:$0xff]   ;;  %v3158_v23 = vld [vmem:[#allocation4 + $0x160] ss:$24 sps:$4 sm:$0xff]   ;;  %v3163_v24 = vld [vmem:[#allocation4 + $0x134] ss:$24 sps:$4 sm:$0xff]  }
  0x30   :  { %415 = vmatprep.subr.bf16.mxu0 %v3108_v5  ;;  %3078 = vmatprep.subr.bf16.mxu1 %v3108_v5  ;;  %v3133_v22 = vld [vmem:[#allocation4 + $0x12c] ss:$24 sps:$4 sm:$0xff]   ;;  %v3131_v25 = vld [vmem:[#allocation4 + $0x128] ss:$24 sps:$4 sm:$0xff]   ;;  %v3138_v26 = vld [vmem:[#allocation4 + $0xfc] ss:$24 sps:$4 sm:$0xff]  }
  0x31   :  { %v3161_v27 = vld [vmem:[#allocation4 + $0x130] ss:$24 sps:$4 sm:$0xff]   ;;  %v3141_v31 = vld [vmem:[#allocation4 + $0xcc] ss:$24 sps:$4 sm:$0xff]   ;;  %v3164_v33 = vld [vmem:[#allocation4 + $0x100] ss:$24 sps:$4 sm:$0xff]  }
  0x32   :  { %v3492_v28 = vld [vmem:[#allocation2 + $0x8] sm:$0xff]   ;;  %v3136_v30 = vld [vmem:[#allocation4 + $0xf8] ss:$24 sps:$4 sm:$0xff]   ;;  %v3166_v32 = vld [vmem:[#allocation4 + $0x104] ss:$24 sps:$4 sm:$0xff]  }
  0x33   :  { %416 = vmatpush1.bf16.msra.mxu0 %v3110_v6  ;;  %3086 = vmatpush1.bf16.msra.mxu1 %v3110_v6  ;;  %v3494_v29 = vld [vmem:[#allocation2 + $0x28] sm:$0xff]   ;;  %v3146_v36 = vld [vmem:[#allocation4 + $0x9c] ss:$24 sps:$4 sm:$0xff]   ;;  %v3144_v39 = vld [vmem:[#allocation4 + $0x98] ss:$24 sps:$4 sm:$0xff]  }
  0x34   :  { %417 = vmatprep.subr.bf16.mxu0 %v3111_v7  ;;  %3079 = vmatprep.subr.bf16.mxu1 %v3111_v7  ;;  %v3139_v34 = vld [vmem:[#allocation4 + $0xc8] ss:$24 sps:$4 sm:$0xff]   ;;  %v3169_v35 = vld [vmem:[#allocation4 + $0xd4] ss:$24 sps:$4 sm:$0xff]   ;;  %v3172_v42 = vld [vmem:[#allocation4 + $0xa4] ss:$24 sps:$4 sm:$0xff]  }
  0x35   :  { %v3500_v37 = vld [vmem:[#allocation2 + $0x10] sm:$0xff]   ;;  %v3149_v40 = vld [vmem:[#allocation4 + $0x6c] ss:$24 sps:$4 sm:$0xff]   ;;  %v3147_v43 = vld [vmem:[#allocation4 + $0x68] ss:$24 sps:$4 sm:$0xff]  }
  0x36   :  { %v3502_v38 = vld [vmem:[#allocation2 + $0x30] sm:$0xff]   ;;  %v3170_v45 = vld [vmem:[#allocation4 + $0xa0] ss:$24 sps:$4 sm:$0xff]   ;;  %v3157_v49 = vld [vmem:[#allocation4 + $0xc] ss:$24 sps:$4 sm:$0xff]  }
  0x37   :  { %418 = vmatpush1.bf16.msra.mxu0 %v3113_v8  ;;  %3087 = vmatpush1.bf16.msra.mxu1 %v3113_v8  ;;  %v3167_v41 = vld [vmem:[#allocation4 + $0xd0] ss:$24 sps:$4 sm:$0xff]   ;;  %v3154_v44 = vld [vmem:[#allocation4 + $0x3c] ss:$24 sps:$4 sm:$0xff]   ;;  %v3184_v54 = vld [vmem:[#allocation6 + $0xac] ss:$12 sps:$4 sm:$0xff]  }
  0x38   :  { %419 = vmatprep.subr.bf16.mxu0 %v3114_v9  ;;  %3080 = vmatprep.subr.bf16.mxu1 %v3114_v9  ;;  %v3508_v46 = vld [vmem:[#allocation2 + $0x18] sm:$0xff]   ;;  %v3175_v50 = vld [vmem:[#allocation4 + $0x74] ss:$24 sps:$4 sm:$0xff]   ;;  %v3173_v51 = vld [vmem:[#allocation4 + $0x70] ss:$24 sps:$4 sm:$0xff]  }
  0x39   :  { %v3510_v47 = vld [vmem:[#allocation2 + $0x38] sm:$0xff]   ;;  %v3155_v53 = vld [vmem:[#allocation4 + $0x8] ss:$24 sps:$4 sm:$0xff]   ;;  %v3181_v56 = vld [vmem:[#allocation4 + $0x14] ss:$24 sps:$4 sm:$0xff]  }
  0x3a   :  { %v3152_v48 = vld [vmem:[#allocation4 + $0x38] ss:$24 sps:$4 sm:$0xff]   ;;  %v3178_v52 = vld [vmem:[#allocation4 + $0x44] ss:$24 sps:$4 sm:$0xff]   ;;  %v3182_v58 = vld [vmem:[#allocation6 + $0xa8] ss:$12 sps:$4 sm:$0xff]  }
  0x3b   :  { %420 = vmatpush1.bf16.msra.mxu0 %v3116_v10  ;;  %3088 = vmatpush1.bf16.msra.mxu1 %v3116_v10  ;;  %v3176_v55 = vld [vmem:[#allocation4 + $0x40] ss:$24 sps:$4 sm:$0xff]   ;;  %v3179_v57 = vld [vmem:[#allocation4 + $0x10] ss:$24 sps:$4 sm:$0xff]  }
  0x3c   :  { %421 = vmatprep.subr.bf16.mxu0 %v3117_v11  ;;  %3081 = vmatprep.subr.bf16.mxu1 %v3117_v11  ;;  %v3187_v59 = vld [vmem:[#allocation6 + $0x94] ss:$12 sps:$4 sm:$0xff]   ;;  %v3211_v60 = vld [vmem:[#allocation6 + $0x22c] ss:$12 sps:$4 sm:$0xff]   ;;  %v3185_v61 = vld [vmem:[#allocation6 + $0x90] ss:$12 sps:$4 sm:$0xff]  }
  0x3d   :  { %v3190_v62 = vld [vmem:[#allocation6 + $0x7c] ss:$12 sps:$4 sm:$0xff]   ;;  %v3217_v1 = vld [vmem:[#allocation6 + $0x214] ss:$12 sps:$4 sm:$0xff]   ;;  %v3188_v2 = vld [vmem:[#allocation6 + $0x78] ss:$12 sps:$4 sm:$0xff]  }
  0x3e   :  { %v3209_v63 = vld [vmem:[#allocation6 + $0x228] ss:$12 sps:$4 sm:$0xff]   ;;  %v3193_v3 = vld [vmem:[#allocation6 + $0x64] ss:$12 sps:$4 sm:$0xff]   ;;  %v3191_v6 = vld [vmem:[#allocation6 + $0x60] ss:$12 sps:$4 sm:$0xff]  }
  0x3f   :  { %422 = vmatpush1.bf16.msra.mxu0 %v3119_v12  ;;  %3089 = vmatpush1.bf16.msra.mxu1 %v3119_v12  ;;  %v3215_v4 = vld [vmem:[#allocation6 + $0x210] ss:$12 sps:$4 sm:$0xff]   ;;  %v3196_v7 = vld [vmem:[#allocation6 + $0x4c] ss:$12 sps:$4 sm:$0xff]   ;;  %v3194_v10 = vld [vmem:[#allocation6 + $0x48] ss:$12 sps:$4 sm:$0xff]  }
  0x40   :  { %423 = vmatprep.subr.bf16.mxu0 %v3120_v13  ;;  %3082 = vmatprep.subr.bf16.mxu1 %v3120_v13  ;;  %v3223_v5 = vld [vmem:[#allocation6 + $0x1fc] ss:$12 sps:$4 sm:$0xff]   ;;  %v3221_v8 = vld [vmem:[#allocation6 + $0x1f8] ss:$12 sps:$4 sm:$0xff]   ;;  %v3199_v11 = vld [vmem:[#allocation6 + $0x34] ss:$12 sps:$4 sm:$0xff]  }
  0x41   :  { %v3229_v9 = vld [vmem:[#allocation6 + $0x1e4] ss:$12 sps:$4 sm:$0xff]   ;;  %v3227_v12 = vld [vmem:[#allocation6 + $0x1e0] ss:$12 sps:$4 sm:$0xff]  }
  0x42   :  { %v3235_v13 = vld [vmem:[#allocation6 + $0x1cc] ss:$12 sps:$4 sm:$0xff]  }
  0x43   :  { %424 = vmatpush1.bf16.msra.mxu0 %v3122_v14  ;;  %3090 = vmatpush1.bf16.msra.mxu1 %v3122_v14  ;;  %v3197_v14 = vld [vmem:[#allocation6 + $0x30] ss:$12 sps:$4 sm:$0xff]  }
  0x44   :  { %425 = vmatprep.subr.bf16.mxu0 %v3123_v15  ;;  %3083 = vmatprep.subr.bf16.mxu1 %v3123_v15  ;;  %v3202_v15 = vld [vmem:[#allocation6 + $0x1c] ss:$12 sps:$4 sm:$0xff]  }
  0x47   :  { %426 = vmatpush1.bf16.msra.mxu0 %v3125_v16  ;;  %3091 = vmatpush1.bf16.msra.mxu1 %v3125_v16  ;;  %v3233_v16 = vld [vmem:[#allocation6 + $0x1c8] ss:$12 sps:$4 sm:$0xff]  }
  0x48   :  { %524 = vmatprep.subr.bf16.mxu1 %v3130_v17  ;;  %637 = vmatprep.subr.bf16.mxu0 %v3160_v20  ;;  %v3200_v17 = vld [vmem:[#allocation6 + $0x18] ss:$12 sps:$4 sm:$0xff]   ;;  %v3203_v20 = vld [vmem:[#allocation6] ss:$12 sps:$4 sm:$0xff]  }
  0x4a   :  { %444 = vmatmul.mubr.bf16.vlgmr.msra.gmra.mxu0 %v3484_v18  ;;  %484 = vmatmul.mubr.bf16.vlgmr.msra.gmra.mxu1 %v3486_v19 }
  0x4b   :  { %525 = vmatpush1.bf16.msra.mxu1 %v3128_v21  ;;  %453 = vmatprep.mubr.bf16.mxu0 %v3447_v0  ;;  %v3208_v21 = vld [vmem:[#allocation6 + $0x16c] ss:$12 sps:$4 sm:$0xff]  }
  0x4c   :  { %526 = vmatprep.subr.bf16.mxu1 %v3133_v22  ;;  %493 = vmatprep.mubr.bf16.mxu1 %v3447_v0  ;;  %v3206_v22 = vld [vmem:[#allocation6 + $0x168] ss:$12 sps:$4 sm:$0xff]  }
  0x4d   :  { %638 = vmatpush1.bf16.msra.mxu0 %v3158_v23  ;;  %v3214_v23 = vld [vmem:[#allocation6 + $0x154] ss:$12 sps:$4 sm:$0xff]  }
  0x4e   :  { %639 = vmatprep.subr.bf16.mxu0 %v3163_v24  ;;  %v3241_v24 = vld [vmem:[#allocation6 + $0x1b4] ss:$12 sps:$4 sm:$0xff]  }
  0x4f   :  { %527 = vmatpush1.bf16.msra.mxu1 %v3131_v25  ;;  %v3212_v25 = vld [vmem:[#allocation6 + $0x150] ss:$12 sps:$4 sm:$0xff]  }
  0x50   :  { %528 = vmatprep.subr.bf16.mxu1 %v3138_v26  ;;  %v3239_v26 = vld [vmem:[#allocation6 + $0x1b0] ss:$12 sps:$4 sm:$0xff]  }
  0x51   :  { %640 = vmatpush1.bf16.msra.mxu0 %v3161_v27  ;;  %v3220_v27 = vld [vmem:[#allocation6 + $0x13c] ss:$12 sps:$4 sm:$0xff]  }
  0x52   :  { %454 = vmatmul.mubr.bf16.gmra.mxu0 %v3492_v28  ;;  %494 = vmatmul.mubr.bf16.gmra.mxu1 %v3494_v29 }
  0x53   :  { %529 = vmatpush1.bf16.msra.mxu1 %v3136_v30  ;;  %463 = vmatprep.mubr.bf16.mxu0 %v3447_v0  ;;  %v3218_v30 = vld [vmem:[#allocation6 + $0x138] ss:$12 sps:$4 sm:$0xff]  }
  0x54   :  { %530 = vmatprep.subr.bf16.mxu1 %v3141_v31  ;;  %503 = vmatprep.mubr.bf16.mxu1 %v3447_v0  ;;  %v3245_v31 = vld [vmem:[#allocation6 + $0x198] ss:$12 sps:$4 sm:$0xff]  }
  0x55   :  { %641 = vmatprep.subr.bf16.mxu0 %v3166_v32  ;;  %v3226_v32 = vld [vmem:[#allocation6 + $0x124] ss:$12 sps:$4 sm:$0xff]  }
  0x56   :  { %642 = vmatpush1.bf16.msra.mxu0 %v3164_v33  ;;  %v3253_v33 = vld [vmem:[#allocation6 + $0x184] ss:$12 sps:$4 sm:$0xff]  }
  0x57   :  { %531 = vmatpush1.bf16.msra.mxu1 %v3139_v34  ;;  %643 = vmatprep.subr.bf16.mxu0 %v3169_v35  ;;  %v3224_v34 = vld [vmem:[#allocation6 + $0x120] ss:$12 sps:$4 sm:$0xff]  }
  0x58   :  { %532 = vmatprep.subr.bf16.mxu1 %v3146_v36  ;;  %v3251_v35 = vld [vmem:[#allocation6 + $0x180] ss:$12 sps:$4 sm:$0xff]  }
  0x59   :  { %v3232_v36 = vld [vmem:[#allocation6 + $0x10c] ss:$12 sps:$4 sm:$0xff]  }
  0x5a   :  { %464 = vmatmul.mubr.bf16.gmra.mxu0 %v3500_v37  ;;  %504 = vmatmul.mubr.bf16.gmra.mxu1 %v3502_v38 }
  0x5b   :  { %533 = vmatpush1.bf16.msra.mxu1 %v3144_v39  ;;  %473 = vmatprep.mubr.bf16.mxu0 %v3447_v0  ;;  %v3230_v39 = vld [vmem:[#allocation6 + $0x108] ss:$12 sps:$4 sm:$0xff]  }
  0x5c   :  { %534 = vmatprep.subr.bf16.mxu1 %v3149_v40  ;;  %513 = vmatprep.mubr.bf16.mxu1 %v3447_v0  ;;  %v3238_v40 = vld [vmem:[#allocation6 + $0xf4] ss:$12 sps:$4 sm:$0xff]  }
  0x5d   :  { %644 = vmatpush1.bf16.msra.mxu0 %v3167_v41  ;;  %v3262_v41 = vld [vmem:[#allocation6 + $0x2d4] ss:$12 sps:$4 sm:$0xff]  }
  0x5e   :  { %645 = vmatprep.subr.bf16.mxu0 %v3172_v42  ;;  %v3236_v42 = vld [vmem:[#allocation6 + $0xf0] ss:$12 sps:$4 sm:$0xff]  }
  0x5f   :  { %535 = vmatpush1.bf16.msra.mxu1 %v3147_v43  ;;  %v3260_v43 = vld [vmem:[#allocation6 + $0x2d0] ss:$12 sps:$4 sm:$0xff]  }
  0x60   :  { %536 = vmatprep.subr.bf16.mxu1 %v3154_v44  ;;  %v3244_v44 = vld [vmem:[#allocation6 + $0xdc] ss:$12 sps:$4 sm:$0xff]  }
  0x61   :  { %646 = vmatpush1.bf16.msra.mxu0 %v3170_v45  ;;  %v3268_v45 = vld [vmem:[#allocation6 + $0x2bc] ss:$12 sps:$4 sm:$0xff]  }
  0x62   :  { %474 = vmatmul.mubr.bf16.gmra.mxu0 %v3508_v46  ;;  %514 = vmatmul.mubr.bf16.gmra.mxu1 %v3510_v47 }
  0x63   :  { %537 = vmatpush1.bf16.msra.mxu1 %v3152_v48  ;;  %556 = vmatprep.mubr.bf16.mxu1 %v3447_v0  ;;  %v3250_v48 = vld [vmem:[#allocation6 + $0xc4] ss:$12 sps:$4 sm:$0xff]  }
  0x64   :  { %538 = vmatprep.subr.bf16.mxu1 %v3157_v49  ;;  %647 = vmatprep.subr.bf16.mxu0 %v3175_v50  ;;  %v3274_v49 = vld [vmem:[#allocation6 + $0x2a4] ss:$12 sps:$4 sm:$0xff]   ;;  %v3248_v50 = vld [vmem:[#allocation6 + $0xc0] ss:$12 sps:$4 sm:$0xff]  }
  0x65   :  { %648 = vmatpush1.bf16.msra.mxu0 %v3173_v51  ;;  %669 = vmatprep.mubr.bf16.mxu0 %v3447_v0  ;;  %v3272_v51 = vld [vmem:[#allocation6 + $0x2a0] ss:$12 sps:$4 sm:$0xff]  }
  0x66   :  { %649 = vmatprep.subr.bf16.mxu0 %v3178_v52  ;;  %v3259_v52 = vld [vmem:[#allocation6 + $0x3ac] ss:$12 sps:$4 sm:$0xff]  }
  0x67   :  { %539 = vmatpush1.bf16.msra.mxu1 %v3155_v53  ;;  %v3280_v53 = vld [vmem:[#allocation6 + $0x28c] ss:$12 sps:$4 sm:$0xff]  }
  0x68   :  { %1854 = vmatprep.subr.bf16.mxu1 %v3184_v54  ;;  %v3278_v54 = vld [vmem:[#allocation6 + $0x288] ss:$12 sps:$4 sm:$0xff]  }
  0x69   :  { %650 = vmatpush1.bf16.msra.mxu0 %v3176_v55  ;;  %v3292_v55 = vld [vmem:[#allocation6 + $0x25c] ss:$12 sps:$4 sm:$0xff]  }
  0x6a   :  { %557 = vmatmul.mubr.bf16.vlgmr.msra.gmra.mxu1 %v3484_v18  ;;  %651 = vmatprep.subr.bf16.mxu0 %v3181_v56  ;;  %v3290_v56 = vld [vmem:[#allocation6 + $0x258] ss:$12 sps:$4 sm:$0xff]  }
  0x6b   :  { %566 = vmatprep.mubr.bf16.mxu1 %v3447_v0  ;;  %1855 = vmatpush1.bf16.msra.mxu1 %v3182_v58  ;;  %v3296_v58 = vld [vmem:[#allocation6 + $0x240] ss:$12 sps:$4 sm:$0xff]  }
  0x6c   :  { %1856 = vmatprep.subr.bf16.mxu1 %v3187_v59  ;;  %v3305_v59 = vld [vmem:[#allocation6 + $0x170] ss:$12 sps:$4 sm:$0xff]  }
  0x6d   :  { %652 = vmatpush1.bf16.msra.mxu0 %v3179_v57  ;;  %v3298_v57 = vld [vmem:[#allocation6 + $0x244] ss:$12 sps:$4 sm:$0xff]  }
  0x6e   :  { %1967 = vmatprep.subr.bf16.mxu0 %v3211_v60 }
  0x6f   :  { %1857 = vmatpush1.bf16.msra.mxu1 %v3185_v61 }
  0x70   :  { %670 = vmatmul.mubr.bf16.vlgmr.msra.gmra.mxu0 %v3484_v18  ;;  %1858 = vmatprep.subr.bf16.mxu1 %v3190_v62  ;;  %v3205_v18 = vld [vmem:[#allocation6 + $0x4] ss:$12 sps:$4 sm:$0xff]  }
  0x71   :  { %679 = vmatprep.mubr.bf16.mxu0 %v3447_v0  ;;  %1968 = vmatpush1.bf16.msra.mxu0 %v3209_v63 }
  0x72   :  { %567 = vmatmul.mubr.bf16.gmra.mxu1 %v3492_v28  ;;  %1969 = vmatprep.subr.bf16.mxu0 %v3217_v1 }
  0x73   :  { %576 = vmatprep.mubr.bf16.mxu1 %v3447_v0  ;;  %1859 = vmatpush1.bf16.msra.mxu1 %v3188_v2 }
  0x74   :  { %1860 = vmatprep.subr.bf16.mxu1 %v3193_v3 }
  0x75   :  { %1970 = vmatpush1.bf16.msra.mxu0 %v3215_v4 }
  0x76   :  { %1971 = vmatprep.subr.bf16.mxu0 %v3223_v5 }
  0x77   :  { %1861 = vmatpush1.bf16.msra.mxu1 %v3191_v6 }
  0x78   :  { %680 = vmatmul.mubr.bf16.gmra.mxu0 %v3492_v28  ;;  %1862 = vmatprep.subr.bf16.mxu1 %v3196_v7  ;;  %v3247_v28 = vld [vmem:[#allocation6 + $0x19c] ss:$12 sps:$4 sm:$0xff]  }
  0x79   :  { %689 = vmatprep.mubr.bf16.mxu0 %v3447_v0  ;;  %1972 = vmatpush1.bf16.msra.mxu0 %v3221_v8 }
  0x7a   :  { %577 = vmatmul.mubr.bf16.gmra.mxu1 %v3500_v37  ;;  %1973 = vmatprep.subr.bf16.mxu0 %v3229_v9 }
  0x7b   :  { %586 = vmatprep.mubr.bf16.mxu1 %v3447_v0  ;;  %1863 = vmatpush1.bf16.msra.mxu1 %v3194_v10 }
  0x7c   :  { %1864 = vmatprep.subr.bf16.mxu1 %v3199_v11 }
  0x7d   :  { %1974 = vmatpush1.bf16.msra.mxu0 %v3227_v12  ;;  %v3257_v12 = vld [vmem:[#allocation6 + $0x3a8] ss:$12 sps:$4 sm:$0xff]  }
  0x7e   :  { %1975 = vmatprep.subr.bf16.mxu0 %v3235_v13 }
  0x7f   :  { %1865 = vmatpush1.bf16.msra.mxu1 %v3197_v14 }
  0x80   :  { %690 = vmatmul.mubr.bf16.gmra.mxu0 %v3500_v37  ;;  %1866 = vmatprep.subr.bf16.mxu1 %v3202_v15  ;;  %v3256_v37 = vld [vmem:[#allocation6 + $0x2ec] ss:$12 sps:$4 sm:$0xff]   ;;  %v3265_v15 = vld [vmem:[#allocation6 + $0x394] ss:$12 sps:$4 sm:$0xff]  }
  0x81   :  { %699 = vmatprep.mubr.bf16.mxu0 %v3447_v0  ;;  %1976 = vmatpush1.bf16.msra.mxu0 %v3233_v16 }
  0x82   :  { %587 = vmatmul.mubr.bf16.gmra.mxu1 %v3508_v46  ;;  %1977 = vmatprep.subr.bf16.mxu0 %v3241_v24 }
  0x83   :  { %596 = vmatprep.mubr.bf16.mxu1 %v3447_v0  ;;  %1867 = vmatpush1.bf16.msra.mxu1 %v3200_v17 }
  0x84   :  { %1868 = vmatprep.subr.bf16.mxu1 %v3205_v18 }
  0x85   :  { %1978 = vmatpush1.bf16.msra.mxu0 %v3239_v26 }
  0x86   :  { %1979 = vmatprep.subr.bf16.mxu0 %v3247_v28 }
  0x87   :  { %1869 = vmatpush1.bf16.msra.mxu1 %v3203_v20 }
  0x88   :  { %700 = vmatmul.mubr.bf16.gmra.mxu0 %v3508_v46  ;;  %1870 = vmatprep.subr.bf16.mxu1 %v3208_v21  ;;  %v3242_v46 = vld [vmem:[#allocation6 + $0xd8] ss:$12 sps:$4 sm:$0xff]  }
  0x89   :  { %709 = vmatprep.mubr.bf16.mxu0 %v3447_v0  ;;  %1980 = vmatpush1.bf16.msra.mxu0 %v3245_v31 }
  0x8a   :  { %597 = vmatmul.mubr.bf16.gmra.mxu1 %v3486_v19  ;;  %1981 = vmatprep.subr.bf16.mxu0 %v3253_v33 }
  0x8b   :  { %606 = vmatprep.mubr.bf16.mxu1 %v3447_v0  ;;  %1871 = vmatpush2.bf16.msra.mxu1 %v3206_v22  ;;  %v3263_v22 = vld [vmem:[#allocation6 + $0x390] ss:$12 sps:$4 sm:$0xff]  }
  0x8c   :  { %1872 = vmatprep.subr.bf16.mxu1 %v3214_v23 }
  0x8d   :  { %1982 = vmatpush1.bf16.msra.mxu0 %v3251_v35  ;;  %v3277_v35 = vld [vmem:[#allocation6 + $0x364] ss:$12 sps:$4 sm:$0xff]  }
  0x8e   :  { %1983 = vmatprep.subr.bf16.mxu0 %v3256_v37 }
  0x8f   :  { %1873 = vmatpush2.bf16.msra.mxu1 %v3212_v25  ;;  %v3271_v25 = vld [vmem:[#allocation6 + $0x37c] ss:$12 sps:$4 sm:$0xff]  }
  0x90   :  { %710 = vmatmul.mubr.bf16.gmra.mxu0 %v3486_v19  ;;  %1874 = vmatprep.subr.bf16.mxu1 %v3220_v27  ;;  %v3254_v19 = vld [vmem:[#allocation6 + $0x2e8] ss:$12 sps:$4 sm:$0xff]  }
  0x91   :  { %719 = vmatprep.mubr.bf16.mxu0 %v3447_v0  ;;  %1984 = vmatpush2.bf16.msra.mxu0 %v3254_v19 }
  0x92   :  { %607 = vmatmul.mubr.bf16.gmra.mxu1 %v3494_v29  ;;  %1985 = vmatprep.subr.bf16.mxu0 %v3262_v41  ;;  %v3275_v41 = vld [vmem:[#allocation6 + $0x360] ss:$12 sps:$4 sm:$0xff]  }
  0x93   :  { %616 = vmatprep.mubr.bf16.mxu1 %v3447_v0  ;;  %1875 = vmatpush2.bf16.msra.mxu1 %v3218_v30 }
  0x94   :  { %1876 = vmatprep.subr.bf16.mxu1 %v3226_v32  ;;  %v3269_v32 = vld [vmem:[#allocation6 + $0x378] ss:$12 sps:$4 sm:$0xff]  }
  0x95   :  { %1986 = vmatpush2.bf16.msra.mxu0 %v3260_v43 }
  0x96   :  { %1987 = vmatprep.subr.bf16.mxu0 %v3268_v45 }
  0x97   :  { %1877 = vmatpush2.bf16.msra.mxu1 %v3224_v34 }
  0x98   :  { %720 = vmatmul.mubr.bf16.gmra.mxu0 %v3494_v29  ;;  %1878 = vmatprep.subr.bf16.mxu1 %v3232_v36  ;;  %v3266_v29 = vld [vmem:[#allocation6 + $0x2b8] ss:$12 sps:$4 sm:$0xff]  }
  0x99   :  { %729 = vmatprep.mubr.bf16.mxu0 %v3447_v0  ;;  %1988 = vmatpush2.bf16.msra.mxu0 %v3266_v29 }
  0x9a   :  { %617 = vmatmul.mubr.bf16.gmra.mxu1 %v3502_v38  ;;  %1989 = vmatprep.subr.bf16.mxu0 %v3274_v49 }
  0x9b   :  { %626 = vmatprep.mubr.bf16.mxu1 %v3447_v0  ;;  %1879 = vmatpush2.bf16.msra.mxu1 %v3230_v39 }
  0x9c   :  { %1880 = vmatprep.subr.bf16.mxu1 %v3238_v40 }
  0x9d   :  { %1990 = vmatpush2.bf16.msra.mxu0 %v3272_v51 }
  0x9e   :  { %1991 = vmatprep.subr.bf16.mxu0 %v3280_v53  ;;  %v3289_v53 = vld [vmem:[#allocation6 + $0x334] ss:$12 sps:$4 sm:$0xff]  }
  0x9f   :  { %1881 = vmatpush2.bf16.msra.mxu1 %v3236_v42 }
  0xa0   :  { %730 = vmatmul.mubr.bf16.gmra.mxu0 %v3502_v38  ;;  %1882 = vmatprep.subr.bf16.mxu1 %v3244_v44  ;;  %v3286_v38 = vld [vmem:[#allocation6 + $0x274] ss:$12 sps:$4 sm:$0xff]   ;;  %v3283_v44 = vld [vmem:[#allocation6 + $0x34c] ss:$12 sps:$4 sm:$0xff]  }
  0xa1   :  { %739 = vmatprep.mubr.bf16.mxu0 %v3447_v0  ;;  %1992 = vmatpush2.bf16.msra.mxu0 %v3278_v54  ;;  %v3284_v0 = vld [vmem:[#allocation6 + $0x270] ss:$12 sps:$4 sm:$0xff]  }
  0xa2   :  { %627 = vmatmul.mubr.bf16.gmra.mxu1 %v3510_v47  ;;  %1993 = vmatprep.subr.bf16.mxu0 %v3286_v38 }
  0xa3   :  { %1883 = vmatpush2.bf16.msra.mxu1 %v3242_v46 }
  0xa4   :  { %1884 = vmatprep.subr.bf16.mxu1 %v3250_v48 }
  0xa5   :  { %1994 = vmatpush2.bf16.msra.mxu0 %v3284_v0 }
  0xa6   :  { %1995 = vmatprep.subr.bf16.mxu0 %v3292_v55 }
  0xa7   :  { %1885 = vmatpush2.bf16.msra.mxu1 %v3248_v50  ;;  %v3281_v50 = vld [vmem:[#allocation6 + $0x348] ss:$12 sps:$4 sm:$0xff]  }
  0xa8   :  { %740 = vmatmul.mubr.bf16.gmra.mxu0 %v3510_v47  ;;  %2080 = vmatprep.subr.bf16.mxu1 %v3259_v52 }
  0xa9   :  { %1996 = vmatpush2.bf16.msra.mxu0 %v3290_v56 }
  0xaa   :  { %1997 = vmatprep.subr.bf16.mxu0 %v3298_v57  ;;  %v3287_v57 = vld [vmem:[#allocation6 + $0x330] ss:$12 sps:$4 sm:$0xff]  }
  0xad   :  { %1998 = vmatpush2.bf16.msra.mxu0 %v3296_v58 }
  0xae   :  { %2884 = vmatprep.subr.bf16.mxu0 %v3305_v59 }
 0x10a   :  { %v445_v60 = vpop.f32.mrf.mxu0  ;;  %v3546_v61 = vpop.f32.mrf.mxu1 }
 0x10b   :  { %v750_v63 = vmax.f32 %v445_v60, 0.0  ;;  %v3295_v60 = vld [vmem:[#allocation6 + $0x31c] ss:$12 sps:$4 sm:$0xff]  }
 0x10c   :  { %v447_v47 = vpop.f32.mrf.mxu0  ;;  %v3548_v62 = vpop.f32.mrf.mxu1 }
 0x10d   :  { %v751_v3 = vmax.f32 %v447_v47, 0.0 }
 0x10e   :  { %v449_v1 = vpop.f32.mrf.mxu0  ;;  %v3550_v2 = vpop.f32.mrf.mxu1 }
 0x10f   :  { %v756_v4 = vmax.f32 %v449_v1, 0.0 }
 0x110   :  { %v451_v5 = vpop.f32.mrf.mxu0  ;;  %v3552_v6 = vpop.f32.mrf.mxu1 }
 0x111   :  { %v757_v7 = vmax.f32 %v451_v5, 0.0  ;;  %v3554_v8 = vpack.c.bf16 %v756_v4, %v750_v63  ;;  %v805_v47 = vmax.f32 %v3552_v6, 0.0  ;;  %v799_v4 = vmax.f32 %v3548_v62, 0.0  ;;  %v3299_v6 = vld [vmem:[#allocation6 + $0x300] ss:$12 sps:$4 sm:$0xff]  }
 0x112   :  { %v455_v9 = vpop.f32.mrf.mxu0  ;;  %v3556_v10 = vpop.f32.mrf.mxu1  ;;  %v804_v62 = vmax.f32 %v3550_v2, 0.0  ;;  %v3302_v2 = vld [vmem:[#allocation6 + $0x468] ss:$12 sps:$4 sm:$0xff]  }
 0x113   :  { %v3558_v11 = vpack.c.bf16 %v757_v7, %v751_v3  ;;  %v762_v16 = vmax.f32 %v455_v9, 0.0  ;;  %v3293_v7 = vld [vmem:[#allocation6 + $0x318] ss:$12 sps:$4 sm:$0xff]  }
 0x114   :  { %v457_v13 = vpop.f32.mrf.mxu0  ;;  %v3560_v14 = vpop.f32.mrf.mxu1 }
 0x115   :  { %1886 = vmatprep.mubr.bf16.mxu1 %v3558_v11  ;;  %v763_v20 = vmax.f32 %v457_v13, 0.0  ;;  %v3602_v13 = vpack.c.bf16 %v805_v47, %v799_v4  ;;  %v810_v47 = vmax.f32 %v3556_v10, 0.0 }
 0x116   :  { %v459_v17 = vpop.f32.mrf.mxu0  ;;  %v3563_v18 = vpop.f32.mrf.mxu1  ;;  %1887 = vmatmul.mubr.bf16.vlgmr.msra.gmra.mxu1 %v3554_v8 }
 0x117   :  { %v768_v21 = vmax.f32 %v459_v17, 0.0  ;;  %2081 = vmatpush1.bf16.msra.mxu1 %v3257_v12  ;;  %v3301_v12 = vld [vmem:[#allocation6 + $0x304] ss:$12 sps:$4 sm:$0xff]  }
 0x118   :  { %v461_v23 = vpop.f32.mrf.mxu0  ;;  %v3566_v24 = vpop.f32.mrf.mxu1  ;;  %2082 = vmatprep.subr.bf16.mxu1 %v3265_v15 }
 0x119   :  { %v769_v26 = vmax.f32 %v461_v23, 0.0  ;;  %v3568_v27 = vpack.c.bf16 %v768_v21, %v762_v16 }
 0x11a   :  { %v465_v28 = vpop.f32.mrf.mxu0  ;;  %v3570_v30 = vpop.f32.mrf.mxu1 }
 0x11b   :  { %v3572_v31 = vpack.c.bf16 %v769_v26, %v763_v20  ;;  %2083 = vmatpush1.bf16.msra.mxu1 %v3263_v22  ;;  %v774_v36 = vmax.f32 %v465_v28, 0.0  ;;  %v3304_v20 = vld [vmem:[#allocation6 + $0x46c] ss:$12 sps:$4 sm:$0xff]   ;;  %v817_v22 = vmax.f32 %v3566_v24, 0.0  ;;  %v798_v26 = vmax.f32 %v3546_v61, 0.0 }
 0x11c   :  { %v467_v33 = vpop.f32.mrf.mxu0  ;;  %v3574_v34 = vpop.f32.mrf.mxu1  ;;  %2084 = vmatprep.subr.bf16.mxu1 %v3271_v25  ;;  %v3306_v24 = vld [vmem:[#allocation6 + $0xb0] ss:$12 sps:$4 sm:$0xff]  }
 0x11d   :  { %1896 = vmatprep.mubr.bf16.mxu1 %v3572_v31  ;;  %v775_v19 = vmax.f32 %v467_v33, 0.0 }
 0x11e   :  { %v469_v37 = vpop.f32.mrf.mxu0  ;;  %v3577_v39 = vpop.f32.mrf.mxu1  ;;  %1897 = vmatmul.mubr.bf16.gmra.mxu1 %v3568_v27 }
 0x11f   :  { %v780_v40 = vmax.f32 %v469_v37, 0.0  ;;  %2085 = vmatpush1.bf16.msra.mxu1 %v3269_v32  ;;  %v3617_v37 = vpack.c.bf16 %v804_v62, %v798_v26  ;;  %v3322_v62 = vld [vmem:[#allocation6 + $0x80] ss:$12 sps:$4 sm:$0xff]  }
 0x120   :  { %v471_v42 = vpop.f32.mrf.mxu0  ;;  %v3580_v43 = vpop.f32.mrf.mxu1  ;;  %2086 = vmatprep.subr.bf16.mxu1 %v3277_v35  ;;  %v811_v35 = vmax.f32 %v3560_v14, 0.0 }
 0x121   :  { %v781_v45 = vmax.f32 %v471_v42, 0.0  ;;  %v3582_v46 = vpack.c.bf16 %v780_v40, %v774_v36 }
 0x122   :  { %v475_v29 = vpop.f32.mrf.mxu0  ;;  %v3584_v48 = vpop.f32.mrf.mxu1  ;;  %v3623_v61 = vpack.c.bf16 %v817_v22, %v811_v35  ;;  %v3315_v22 = vld [vmem:[#allocation6 + $0x420] ss:$12 sps:$4 sm:$0xff]  }
 0x123   :  { %v3586_v49 = vpack.c.bf16 %v781_v45, %v775_v19  ;;  %2087 = vmatpush1.bf16.msra.mxu1 %v3275_v41  ;;  %v786_v54 = vmax.f32 %v475_v29, 0.0  ;;  %v3309_v41 = vld [vmem:[#allocation6 + $0x454] ss:$12 sps:$4 sm:$0xff]   ;;  %v3307_v29 = vld [vmem:[#allocation6 + $0x450] ss:$12 sps:$4 sm:$0xff]  }
 0x124   :  { %v477_v51 = vpop.f32.mrf.mxu0  ;;  %v3588_v52 = vpop.f32.mrf.mxu1  ;;  %2088 = vmatprep.subr.bf16.mxu1 %v3283_v44  ;;  %v3313_v44 = vld [vmem:[#allocation6 + $0x158] ss:$12 sps:$4 sm:$0xff]  }
 0x125   :  { %1906 = vmatprep.mubr.bf16.mxu1 %v3586_v49  ;;  %v787_v55 = vmax.f32 %v477_v51, 0.0 }
 0x126   :  { %v479_v38 = vpop.f32.mrf.mxu0  ;;  %v3591_v0 = vpop.f32.mrf.mxu1  ;;  %1907 = vmatmul.mubr.bf16.gmra.mxu1 %v3582_v46 }
 0x127   :  { %v792_v56 = vmax.f32 %v479_v38, 0.0  ;;  %2089 = vmatpush1.bf16.msra.mxu1 %v3281_v50  ;;  %v816_v50 = vmax.f32 %v3563_v18, 0.0  ;;  %v3314_v38 = vld [vmem:[#allocation6 + $0x98] ss:$12 sps:$4 sm:$0xff]   ;;  %v823_v18 = vmax.f32 %v3574_v34, 0.0 }
 0x128   :  { %v481_v58 = vpop.f32.mrf.mxu0  ;;  %v3594_v59 = vpop.f32.mrf.mxu1  ;;  %2090 = vmatprep.subr.bf16.mxu1 %v3289_v53  ;;  %v3329_v34 = vld [vmem:[#allocation6 + $0x128] ss:$12 sps:$4 sm:$0xff]  }
 0x129   :  { %v793_v63 = vmax.f32 %v481_v58, 0.0  ;;  %v3597_v1 = vpack.c.bf16 %v792_v56, %v786_v54  ;;  %v3312_v54 = vld [vmem:[#allocation6 + $0x43c] ss:$12 sps:$4 sm:$0xff]   ;;  %v829_v56 = vmax.f32 %v3580_v43, 0.0 }
 0x12a   :  { %v558_v3 = vpop.f32.mrf.mxu1 }
 0x12b   :  { %v3600_v5 = vpack.c.bf16 %v793_v63, %v787_v55  ;;  %2091 = vmatpush1.bf16.msra.mxu1 %v3287_v57  ;;  %v752_v28 = vmax.f32 %v558_v3, 0.0 }
 0x12c   :  { %v560_v9 = vpop.f32.mrf.mxu1  ;;  %2092 = vmatprep.subr.bf16.mxu1 %v3295_v60  ;;  %v3321_v60 = vld [vmem:[#allocation6 + $0x140] ss:$12 sps:$4 sm:$0xff]  }
 0x12d   :  { %1916 = vmatprep.mubr.bf16.mxu1 %v3600_v5  ;;  %v753_v23 = vmax.f32 %v560_v9, 0.0  ;;  %v3310_v9 = vld [vmem:[#allocation6 + $0x438] ss:$12 sps:$4 sm:$0xff]  }
 0x12e   :  { %v562_v15 = vpop.f32.mrf.mxu1  ;;  %1917 = vmatmul.mubr.bf16.gmra.mxu1 %v3597_v1 }
 0x12f   :  { %1926 = vmatprep.mubr.bf16.mxu1 %v3602_v13  ;;  %2093 = vmatpush1.bf16.msra.mxu1 %v3293_v7  ;;  %v758_v16 = vmax.f32 %v562_v15, 0.0 }
 0x130   :  { %v564_v17 = vpop.f32.mrf.mxu1  ;;  %2094 = vmatprep.subr.bf16.mxu1 %v3301_v12  ;;  %v3608_v21 = vpop.f32.mrf.mxu0  ;;  %v3641_v12 = vpack.c.bf16 %v816_v50, %v810_v47 }
 0x131   :  { %v759_v25 = vmax.f32 %v564_v17, 0.0  ;;  %v3619_v19 = vpack.c.bf16 %v758_v16, %v752_v28  ;;  %v3647_v16 = vpack.c.bf16 %v829_v56, %v823_v18  ;;  %v3320_v28 = vld [vmem:[#allocation6 + $0x40c] ss:$12 sps:$4 sm:$0xff]   ;;  %v3325_v56 = vld [vmem:[#allocation6 + $0x3f4] ss:$12 sps:$4 sm:$0xff]  }
 0x132   :  { %v568_v32 = vpop.f32.mrf.mxu1  ;;  %v3612_v33 = vpop.f32.mrf.mxu0 }
 0x133   :  { %v3615_v36 = vpack.c.bf16 %v759_v25, %v753_v23  ;;  %2095 = vmatpush1.bf16.msra.mxu1 %v3299_v6  ;;  %v764_v63 = vmax.f32 %v568_v32, 0.0  ;;  %v3317_v6 = vld [vmem:[#allocation6 + $0x424] ss:$12 sps:$4 sm:$0xff]   ;;  %v828_v23 = vmax.f32 %v3577_v39, 0.0  ;;  %v3330_v32 = vld [vmem:[#allocation6 + $0x68] ss:$12 sps:$4 sm:$0xff]  }
 0x134   :  { %v570_v40 = vpop.f32.mrf.mxu1  ;;  %2096 = vmatprep.subr.bf16.mxu1 %v3304_v20  ;;  %v3621_v42 = vpop.f32.mrf.mxu0  ;;  %v835_v39 = vmax.f32 %v3588_v52, 0.0  ;;  %v3336_v52 = vld [vmem:[#allocation6 + $0xf8] ss:$12 sps:$4 sm:$0xff]  }
 0x135   :  { %1999 = vmatprep.mubr.bf16.mxu0 %v3615_v36  ;;  %v765_v57 = vmax.f32 %v570_v40, 0.0 }
 0x136   :  { %v572_v14 = vpop.f32.mrf.mxu1  ;;  %1927 = vmatmul.mubr.bf16.gmra.mxu1 %v3617_v37  ;;  %2000 = vmatmul.mubr.bf16.vlgmr.msra.gmra.mxu0 %v3619_v19  ;;  %v3628_v45 = vpop.f32.mrf.mxu0 }
 0x137   :  { %1936 = vmatprep.mubr.bf16.mxu1 %v3623_v61  ;;  %2097 = vmatpush2.bf16.msra.mxu1 %v3302_v2  ;;  %v770_v51 = vmax.f32 %v572_v14, 0.0  ;;  %v841_v2 = vmax.f32 %v3594_v59, 0.0  ;;  %v761_v18 = vmax.f32 %v3628_v45, 0.0 }
 0x138   :  { %2885 = vmatpush3.bf16.msra.mxu0 %v3306_v24  ;;  %v574_v53 = vpop.f32.mrf.mxu1  ;;  %2098 = vmatprep.subr.bf16.mxu1 %v3309_v41  ;;  %v3632_v55 = vpop.f32.mrf.mxu0  ;;  %v3334_v41 = vld [vmem:[#allocation6 + $0x110] ss:$12 sps:$4 sm:$0xff]  }
 0x139   :  { %v771_v58 = vmax.f32 %v574_v53, 0.0  ;;  %2886 = vmatprep.subr.bf16.mxu0 %v3313_v44  ;;  %v3643_v15 = vpack.c.bf16 %v770_v51, %v764_v63  ;;  %v822_v44 = vmax.f32 %v3570_v30, 0.0  ;;  %v3318_v53 = vld [vmem:[#allocation6 + $0x408] ss:$12 sps:$4 sm:$0xff]   ;;  %v3323_v63 = vld [vmem:[#allocation6 + $0x3f0] ss:$12 sps:$4 sm:$0xff]  }
 0x13a   :  { %v578_v3 = vpop.f32.mrf.mxu1  ;;  %v3636_v4 = vpop.f32.mrf.mxu0 }
 0x13b   :  { %v3639_v7 = vpack.c.bf16 %v771_v58, %v765_v57  ;;  %2099 = vmatpush2.bf16.msra.mxu1 %v3307_v29  ;;  %v776_v14 = vmax.f32 %v578_v3, 0.0  ;;  %v3335_v57 = vld [vmem:[#allocation6 + $0x50] ss:$12 sps:$4 sm:$0xff]   ;;  %v3671_v58 = vpack.c.bf16 %v841_v2, %v835_v39  ;;  %v755_v3 = vmax.f32 %v3612_v33, 0.0 }
 0x13c   :  { %v580_v43 = vpop.f32.mrf.mxu1  ;;  %2100 = vmatprep.subr.bf16.mxu1 %v3312_v54  ;;  %2887 = vmatpush3.bf16.msra.mxu0 %v3314_v38  ;;  %v3645_v10 = vpop.f32.mrf.mxu0  ;;  %v3665_v54 = vpack.c.bf16 %v828_v23, %v822_v44  ;;  %v3333_v44 = vld [vmem:[#allocation6 + $0x3c4] ss:$12 sps:$4 sm:$0xff]   ;;  %v754_v39 = vmax.f32 %v3608_v21, 0.0 }
 0x13d   :  { %2009 = vmatprep.mubr.bf16.mxu0 %v3639_v7  ;;  %2888 = vmatprep.subr.bf16.mxu0 %v3321_v60  ;;  %v777_v40 = vmax.f32 %v580_v43, 0.0  ;;  %v3689_v2 = vpack.c.bf16 %v761_v18, %v755_v3  ;;  %v3342_v18 = vld [vmem:[#allocation6 + $0x2f0] ss:$12 sps:$4 sm:$0xff]  }
 0x13e   :  { %v582_v17 = vpop.f32.mrf.mxu1  ;;  %1937 = vmatmul.mubr.bf16.gmra.mxu1 %v3641_v12  ;;  %2010 = vmatmul.mubr.bf16.gmra.mxu0 %v3643_v15  ;;  %v3652_v20 = vpop.f32.mrf.mxu0 }
 0x13f   :  { %1946 = vmatprep.mubr.bf16.mxu1 %v3647_v16  ;;  %2101 = vmatpush2.bf16.msra.mxu1 %v3310_v9  ;;  %v782_v25 = vmax.f32 %v582_v17, 0.0  ;;  %v840_v9 = vmax.f32 %v3591_v0, 0.0  ;;  %v3326_v0 = vld [vmem:[#allocation6 + $0x3d8] ss:$12 sps:$4 sm:$0xff]  }
 0x140   :  { %v584_v26 = vpop.f32.mrf.mxu1  ;;  %2102 = vmatprep.subr.bf16.mxu1 %v3317_v6  ;;  %2889 = vmatpush3.bf16.msra.mxu0 %v3322_v62  ;;  %v3656_v35 = vpop.f32.mrf.mxu0  ;;  %v3328_v62 = vld [vmem:[#allocation6 + $0x3dc] ss:$12 sps:$4 sm:$0xff]  }
 0x141   :  { %v783_v24 = vmax.f32 %v584_v26, 0.0  ;;  %2890 = vmatprep.subr.bf16.mxu0 %v3329_v34  ;;  %v3667_v38 = vpack.c.bf16 %v782_v25, %v776_v14  ;;  %v3337_v34 = vld [vmem:[#allocation6 + $0x38] ss:$12 sps:$4 sm:$0xff]   ;;  %v3338_v25 = vld [vmem:[#allocation6 + $0xe0] ss:$12 sps:$4 sm:$0xff]   ;;  %v834_v26 = vmax.f32 %v3584_v48, 0.0 }
 0x142   :  { %v588_v29 = vpop.f32.mrf.mxu1  ;;  %v3660_v50 = vpop.f32.mrf.mxu0  ;;  %v3339_v48 = vld [vmem:[#allocation6 + $0x20] ss:$12 sps:$4 sm:$0xff]  }
 0x143   :  { %v3663_v51 = vpack.c.bf16 %v783_v24, %v777_v40  ;;  %2103 = vmatpush2.bf16.msra.mxu1 %v3315_v22  ;;  %v3691_v40 = vpack.c.bf16 %v840_v9, %v834_v26 }
 0x144   :  { %v590_v59 = vpop.f32.mrf.mxu1  ;;  %2104 = vmatprep.subr.bf16.mxu1 %v3320_v28  ;;  %2891 = vmatpush3.bf16.msra.mxu0 %v3330_v32  ;;  %v3669_v30 = vpop.f32.mrf.mxu0  ;;  %v788_v28 = vmax.f32 %v588_v29, 0.0  ;;  %v3340_v29 = vld [vmem:[#allocation6 + $0xc8] ss:$12 sps:$4 sm:$0xff]  }
 0x145   :  { %2019 = vmatprep.mubr.bf16.mxu0 %v3663_v51  ;;  %2892 = vmatprep.subr.bf16.mxu0 %v3334_v41  ;;  %v789_v22 = vmax.f32 %v590_v59, 0.0  ;;  %v760_v59 = vmax.f32 %v3621_v42, 0.0  ;;  %v3341_v42 = vld [vmem:[#allocation6 + $0x8] ss:$12 sps:$4 sm:$0xff]  }
 0x146   :  { %v592_v60 = vpop.f32.mrf.mxu1  ;;  %1947 = vmatmul.mubr.bf16.gmra.mxu1 %v3665_v54  ;;  %2020 = vmatmul.mubr.bf16.gmra.mxu0 %v3667_v38  ;;  %v3676_v47 = vpop.f32.mrf.mxu0 }
 0x147   :  { %1956 = vmatprep.mubr.bf16.mxu1 %v3671_v58  ;;  %2105 = vmatpush2.bf16.msra.mxu1 %v3318_v53  ;;  %v794_v43 = vmax.f32 %v592_v60, 0.0  ;;  %v773_v60 = vmax.f32 %v3652_v20, 0.0 }
 0x148   :  { %v594_v6 = vpop.f32.mrf.mxu1  ;;  %2106 = vmatprep.subr.bf16.mxu1 %v3325_v56  ;;  %2893 = vmatpush3.bf16.msra.mxu0 %v3335_v57  ;;  %v3682_v17 = vpop.f32.mrf.mxu0  ;;  %v3331_v57 = vld [vmem:[#allocation6 + $0x3c0] ss:$12 sps:$4 sm:$0xff]  }
 0x149   :  { %v795_v23 = vmax.f32 %v594_v6, 0.0  ;;  %2894 = vmatprep.subr.bf16.mxu0 %v3336_v52  ;;  %v3693_v24 = vpack.c.bf16 %v794_v43, %v788_v28  ;;  %v767_v52 = vmax.f32 %v3636_v4, 0.0  ;;  %v3344_v6 = vld [vmem:[#allocation6 + $0x470] ss:$12 sps:$4 sm:$0xff]  }
 0x14a   :  { %v598_v33 = vpop.f32.mrf.mxu1  ;;  %v3685_v32 = vpop.f32.mrf.mxu0 }
 0x14b   :  { %v3687_v45 = vpack.c.bf16 %v795_v23, %v789_v22  ;;  %2107 = vmatpush2.bf16.msra.mxu1 %v3323_v63  ;;  %v3715_v20 = vpack.c.bf16 %v773_v60, %v767_v52 }
 0x14c   :  { %v600_v41 = vpop.f32.mrf.mxu1  ;;  %2108 = vmatprep.subr.bf16.mxu1 %v3328_v62  ;;  %2895 = vmatpush3.bf16.msra.mxu0 %v3337_v34  ;;  %v3695_v14 = vpop.f32.mrf.mxu0  ;;  %v800_v62 = vmax.f32 %v598_v33, 0.0  ;;  %v3709_v34 = vpack.c.bf16 %v760_v59, %v754_v39  ;;  %v766_v33 = vmax.f32 %v3632_v55, 0.0  ;;  %v779_v39 = vmax.f32 %v3660_v50, 0.0  ;;  %v3347_v59 = vld [vmem:[#allocation6 + $0x218] ss:$12 sps:$4 sm:$0xff]  }
 0x14d   :  { %2029 = vmatprep.mubr.bf16.mxu0 %v3687_v45  ;;  %2896 = vmatprep.subr.bf16.mxu0 %v3338_v25  ;;  %v801_v9 = vmax.f32 %v600_v41, 0.0  ;;  %v3343_v25 = vld [vmem:[#allocation6 + $0x230] ss:$12 sps:$4 sm:$0xff]   ;;  %v3346_v41 = vld [vmem:[#allocation6 + $0x2d8] ss:$12 sps:$4 sm:$0xff]  }
 0x14e   :  { %v602_v53 = vpop.f32.mrf.mxu1  ;;  %1957 = vmatmul.mubr.bf16.gmra.mxu1 %v3691_v40  ;;  %2030 = vmatmul.mubr.bf16.gmra.mxu0 %v3693_v24  ;;  %v3702_v56 = vpop.f32.mrf.mxu0 }
 0x14f   :  { %2109 = vmatpush2.bf16.msra.mxu1 %v3326_v0  ;;  %2112 = vmatprep.mubr.bf16.mxu1 %v3689_v2  ;;  %v806_v63 = vmax.f32 %v602_v53, 0.0  ;;  %v785_v53 = vmax.f32 %v3676_v47, 0.0  ;;  %v3350_v47 = vld [vmem:[#allocation6 + $0x200] ss:$12 sps:$4 sm:$0xff]  }
 0x150   :  { %v604_v3 = vpop.f32.mrf.mxu1  ;;  %2110 = vmatprep.subr.bf16.mxu1 %v3333_v44  ;;  %2897 = vmatpush3.bf16.msra.mxu0 %v3339_v48  ;;  %v3707_v21 = vpop.f32.mrf.mxu0  ;;  %v772_v48 = vmax.f32 %v3645_v10, 0.0  ;;  %v3348_v10 = vld [vmem:[#allocation6 + $0x2c0] ss:$12 sps:$4 sm:$0xff]  }
 0x151   :  { %v807_v43 = vmax.f32 %v604_v3, 0.0  ;;  %2898 = vmatprep.subr.bf16.mxu0 %v3340_v29  ;;  %v3717_v26 = vpack.c.bf16 %v806_v63, %v800_v62 }
 0x152   :  { %v608_v4 = vpop.f32.mrf.mxu1  ;;  %v3711_v22 = vpop.f32.mrf.mxu0 }
 0x153   :  { %v3713_v23 = vpack.c.bf16 %v807_v43, %v801_v9  ;;  %2111 = vmatpush2.bf16.msra.mxu1 %v3331_v57  ;;  %v812_v3 = vmax.f32 %v608_v4, 0.0  ;;  %v3739_v43 = vpack.c.bf16 %v785_v53, %v779_v39  ;;  %v778_v4 = vmax.f32 %v3656_v35, 0.0  ;;  %v3353_v53 = vld [vmem:[#allocation6 + $0x1e8] ss:$12 sps:$4 sm:$0xff]  }
 0x154   :  { %v610_v28 = vpop.f32.mrf.mxu1  ;;  %v3719_v0 = vpop.f32.mrf.mxu0  ;;  %2899 = vmatpush3.bf16.msra.mxu0 %v3341_v42  ;;  %2948 = vmatprep.subr.bf16.mxu1 %v3342_v18  ;;  %v3733_v42 = vpack.c.bf16 %v772_v48, %v766_v33  ;;  %v784_v33 = vmax.f32 %v3669_v30, 0.0  ;;  %v791_v48 = vmax.f32 %v3685_v32, 0.0  ;;  %v797_v39 = vmax.f32 %v3702_v56, 0.0  ;;  %v3354_v30 = vld [vmem:[#allocation6 + $0x290] ss:$12 sps:$4 sm:$0xff]  }
 0x155   :  { %2039 = vmatprep.mubr.bf16.mxu0 %v3713_v23  ;;  %3012 = vmatprep.subr.bf16.mxu0 %v3344_v6  ;;  %v813_v60 = vmax.f32 %v610_v28, 0.0  ;;  %4303 = vst [vmem:[#allocation10_spill] sm:$0xff] %v3739_v43  ;;  %v3352_v28 = vld [vmem:[#allocation6 + $0x2a8] ss:$12 sps:$4 sm:$0xff]   ;;  %v3356_v56 = vld [vmem:[#allocation6 + $0x1d0] ss:$12 sps:$4 sm:$0xff]  }
 0x156   :  { %v612_v44 = vpop.f32.mrf.mxu1  ;;  %2040 = vmatmul.mubr.bf16.gmra.mxu0 %v3717_v26  ;;  %2113 = vmatmul.mubr.bf16.vlgmr.msra.gmra.mxu1 %v3709_v34  ;;  %v3726_v29 = vpop.f32.mrf.mxu0  ;;  %4302 = vst [vmem:[#allocation9_spill] sm:$0xff] %v3733_v42  ;;  %v3761_v32 = vpack.c.bf16 %v797_v39, %v791_v48  ;;  %v3359_v39 = vld [vmem:[#allocation6 + $0x1b8] ss:$12 sps:$4 sm:$0xff]  }
 0x157   :  { %2122 = vmatprep.mubr.bf16.mxu1 %v3715_v20  ;;  %2949 = vmatpush3.bf16.msra.mxu1 %v3343_v25  ;;  %v818_v57 = vmax.f32 %v612_v44, 0.0  ;;  %v809_v48 = vmax.f32 %v3726_v29, 0.0 }
 0x158   :  { %v614_v52 = vpop.f32.mrf.mxu1  ;;  %v3731_v55 = vpop.f32.mrf.mxu0  ;;  %2950 = vmatprep.subr.bf16.mxu1 %v3346_v41  ;;  %4304 = vst [vmem:[#allocation11_spill] sm:$0xff] %v3761_v32 }
 0x159   :  { %v819_v63 = vmax.f32 %v614_v52, 0.0  ;;  %v3741_v6 = vpack.c.bf16 %v818_v57, %v812_v3 }
 0x15a   :  { %v618_v18 = vpop.f32.mrf.mxu1  ;;  %v3735_v9 = vpop.f32.mrf.mxu0 }
 0x15b   :  { %v3737_v50 = vpack.c.bf16 %v819_v63, %v813_v60  ;;  %2951 = vmatpush3.bf16.msra.mxu1 %v3347_v59  ;;  %v824_v60 = vmax.f32 %v618_v18, 0.0  ;;  %v3757_v63 = vpack.c.bf16 %v784_v33, %v778_v4  ;;  %v790_v18 = vmax.f32 %v3682_v17, 0.0  ;;  %v3360_v17 = vld [vmem:[#allocation6 + $0x260] ss:$12 sps:$4 sm:$0xff]  }
 0x15c   :  { %v620_v62 = vpop.f32.mrf.mxu1  ;;  %v3743_v25 = vpop.f32.mrf.mxu0  ;;  %2952 = vmatprep.subr.bf16.mxu1 %v3348_v10  ;;  %v796_v4 = vmax.f32 %v3695_v14, 0.0  ;;  %v803_v33 = vmax.f32 %v3711_v22, 0.0 }
 0x15d   :  { %2049 = vmatprep.mubr.bf16.mxu0 %v3737_v50  ;;  %v825_v52 = vmax.f32 %v620_v62, 0.0 }
 0x15e   :  { %v622_v41 = vpop.f32.mrf.mxu1  ;;  %2050 = vmatmul.mubr.bf16.gmra.mxu0 %v3741_v6  ;;  %2123 = vmatmul.mubr.bf16.gmra.mxu1 %v3733_v42  ;;  %v3750_v44 = vpop.f32.mrf.mxu0  ;;  %v3781_v22 = vpack.c.bf16 %v809_v48, %v803_v33  ;;  %v3365_v33 = vld [vmem:[#allocation6 + $0x188] ss:$12 sps:$4 sm:$0xff]  }
 0x15f   :  { %2132 = vmatprep.mubr.bf16.mxu1 %v3739_v43  ;;  %2953 = vmatpush3.bf16.msra.mxu1 %v3350_v47  ;;  %v830_v59 = vmax.f32 %v622_v41, 0.0 }
 0x160   :  { %v624_v57 = vpop.f32.mrf.mxu1  ;;  %v3755_v35 = vpop.f32.mrf.mxu0  ;;  %2954 = vmatprep.subr.bf16.mxu1 %v3352_v28  ;;  %v3358_v28 = vld [vmem:[#allocation6 + $0x278] ss:$12 sps:$4 sm:$0xff]  }
 0x161   :  { %v831_v10 = vmax.f32 %v624_v57, 0.0  ;;  %v3763_v47 = vpack.c.bf16 %v830_v59, %v824_v60 }
 0x162   :  { %v628_v3 = vpop.f32.mrf.mxu1  ;;  %v3765_v43 = vpop.f32.mrf.mxu0 }
 0x163   :  { %v3759_v42 = vpack.c.bf16 %v831_v10, %v825_v52  ;;  %2955 = vmatpush3.bf16.msra.mxu1 %v3353_v53  ;;  %v836_v52 = vmax.f32 %v628_v3, 0.0  ;;  %v3777_v10 = vpack.c.bf16 %v796_v4, %v790_v18  ;;  %v815_v3 = vmax.f32 %v3735_v9, 0.0 }
 0x164   :  { %v630_v41 = vpop.f32.mrf.mxu1  ;;  %2956 = vmatprep.subr.bf16.mxu1 %v3354_v30  ;;  %v3775_v57 = vpop.f32.mrf.mxu0  ;;  %v821_v18 = vmax.f32 %v3750_v44, 0.0  ;;  %v827_v9 = vmax.f32 %v3765_v43, 0.0  ;;  %v3351_v44 = vld [vmem:[#allocation6 + $0x398] ss:$12 sps:$4 sm:$0xff]  }
 0x165   :  { %2059 = vmatprep.mubr.bf16.mxu0 %v3759_v42  ;;  %v837_v30 = vmax.f32 %v630_v41, 0.0  ;;  %v808_v41 = vmax.f32 %v3719_v0, 0.0  ;;  %v832_v43 = vmax.f32 %v3775_v57, 0.0  ;;  %v3368_v57 = vld [vmem:[#allocation6 + $0x3f8] ss:$12 sps:$4 sm:$0xff]  }
 0x166   :  { %v632_v62 = vpop.f32.mrf.mxu1  ;;  %2060 = vmatmul.mubr.bf16.gmra.mxu0 %v3763_v47  ;;  %2133 = vmatmul.mubr.bf16.gmra.mxu1 %v3757_v63  ;;  %v737_v29 = vpop.f32.mrf.mxu0  ;;  %v3796_v0 = vpack.c.bf16 %v821_v18, %v815_v3 }
 0x167   :  { %2142 = vmatprep.mubr.bf16.mxu1 %v3761_v32  ;;  %2957 = vmatpush3.bf16.msra.mxu1 %v3356_v56  ;;  %v842_v53 = vmax.f32 %v632_v62, 0.0  ;;  %v3362_v56 = vld [vmem:[#allocation6 + $0x1a0] ss:$12 sps:$4 sm:$0xff]   ;;  %v3364_v62 = vld [vmem:[#allocation6 + $0x248] ss:$12 sps:$4 sm:$0xff]  }
 0x168   :  { %v634_v59 = vpop.f32.mrf.mxu1  ;;  %2958 = vmatprep.subr.bf16.mxu1 %v3358_v28  ;;  %v802_v28 = vmax.f32 %v3707_v21, 0.0  ;;  %v741_v4 = vpop.f32.mrf.mxu0  ;;  %v3345_v21 = vld [vmem:[#allocation6 + $0x3b0] ss:$12 sps:$4 sm:$0xff]  }
 0x169   :  { %v843_v14 = vmax.f32 %v634_v59, 0.0  ;;  %v3783_v32 = vpack.c.bf16 %v842_v53, %v836_v52  ;;  %v820_v59 = vmax.f32 %v3743_v25, 0.0  ;;  %v3357_v25 = vld [vmem:[#allocation6 + $0x380] ss:$12 sps:$4 sm:$0xff]  }
 0x16a   :  { %v3794_v48 = vpack.c.bf16 %v808_v41, %v802_v28  ;;  %v743_v53 = vpop.f32.mrf.mxu0  ;;  %v3363_v28 = vld [vmem:[#allocation6 + $0x368] ss:$12 sps:$4 sm:$0xff]   ;;  %v3366_v41 = vld [vmem:[#allocation6 + $0x410] ss:$12 sps:$4 sm:$0xff]  }
 0x16b   :  { %v3779_v60 = vpack.c.bf16 %v843_v14, %v837_v30  ;;  %2959 = vmatpush3.bf16.msra.mxu1 %v3359_v39  ;;  %v3349_v39 = vld [vmem:[#allocation6 + $0x458] ss:$12 sps:$4 sm:$0xff]   ;;  %v3355_v14 = vld [vmem:[#allocation6 + $0x440] ss:$12 sps:$4 sm:$0xff]  }
 0x16c   :  { %2960 = vmatprep.subr.bf16.mxu1 %v3360_v17  ;;  %v833_v17 = vmax.f32 %v737_v29, 0.0  ;;  %v745_v30 = vpop.f32.mrf.mxu0  ;;  %v839_v29 = vmax.f32 %v743_v53, 0.0  ;;  %v3371_v53 = vld [vmem:[#allocation6 + $0x320] ss:$12 sps:$4 sm:$0xff]  }
 0x16d   :  { %2069 = vmatprep.mubr.bf16.mxu0 %v3779_v60 }
 0x16e   :  { %2070 = vmatmul.mubr.bf16.gmra.mxu0 %v3783_v32  ;;  %2143 = vmatmul.mubr.bf16.gmra.mxu1 %v3777_v10 }
 0x16f   :  { %2225 = vmatprep.mubr.bf16.mxu0 %v3558_v11  ;;  %2152 = vmatprep.mubr.bf16.mxu1 %v3781_v22  ;;  %v814_v11 = vmax.f32 %v3731_v55, 0.0  ;;  %v3807_v55 = vpack.c.bf16 %v833_v17, %v827_v9 }
 0x170   :  { %2961 = vmatpush3.bf16.msra.mxu1 %v3362_v56  ;;  %v3361_v56 = vld [vmem:[#allocation6 + $0x428] ss:$12 sps:$4 sm:$0xff]  }
 0x171   :  { %2962 = vmatprep.subr.bf16.mxu1 %v3364_v62  ;;  %v3805_v52 = vpack.c.bf16 %v820_v59, %v814_v11  ;;  %v3372_v11 = vld [vmem:[#allocation6 + $0x3c8] ss:$12 sps:$4 sm:$0xff]  }
 0x174   :  { %2963 = vmatpush3.bf16.msra.mxu1 %v3365_v33  ;;  %v838_v33 = vmax.f32 %v741_v4, 0.0 }
 0x176   :  { %2153 = vmatmul.mubr.bf16.gmra.mxu1 %v3794_v48  ;;  %2226 = vmatmul.mubr.bf16.vlgmr.msra.gmra.mxu0 %v3554_v8  ;;  %v747_v8 = vpop.f32.mrf.mxu0 }
 0x177   :  { %2233 = vmatprep.mubr.bf16.mxu0 %v3572_v31  ;;  %3013 = vmatpush3.bf16.msra.mxu0 %v3345_v21  ;;  %v826_v31 = vmax.f32 %v3755_v35, 0.0  ;;  %v845_v62 = vmax.f32 %v747_v8, 0.0  ;;  %v3367_v35 = vld [vmem:[#allocation6 + $0x350] ss:$12 sps:$4 sm:$0xff]   ;;  %v3370_v21 = vld [vmem:[#allocation6 + $0x3e0] ss:$12 sps:$4 sm:$0xff]  }
 0x178   :  { %2162 = vmatprep.mubr.bf16.mxu1 %v3796_v0  ;;  %3014 = vmatprep.subr.bf16.mxu0 %v3349_v39 }
 0x179   :  { %v3815_v3 = vpack.c.bf16 %v832_v43, %v826_v31  ;;  %v3817_v18 = vpack.c.bf16 %v845_v62, %v839_v29 }
 0x17b   :  { %3015 = vmatpush3.bf16.msra.mxu0 %v3351_v44 }
 0x17c   :  { %3016 = vmatprep.subr.bf16.mxu0 %v3355_v14 }
 0x17e   :  { %2163 = vmatmul.mubr.bf16.gmra.mxu1 %v3805_v52  ;;  %2234 = vmatmul.mubr.bf16.gmra.mxu0 %v3568_v27  ;;  %v844_v27 = vmax.f32 %v745_v30, 0.0 }
 0x17f   :  { %2241 = vmatprep.mubr.bf16.mxu0 %v3586_v49  ;;  %2172 = vmatprep.mubr.bf16.mxu1 %v3807_v55  ;;  %v3369_v49 = vld [vmem:[#allocation6 + $0x338] ss:$12 sps:$4 sm:$0xff]  }
 0x180   :  { %3017 = vmatpush3.bf16.msra.mxu0 %v3357_v25  ;;  %v892_v39 = vpack.c.bf16 %v844_v27, %v838_v33  ;;  %v2534_v27 = vlaneseq }
 0x181   :  { %3018 = vmatprep.subr.bf16.mxu0 %v3361_v56 }
 0x184   :  { %3019 = vmatpush3.bf16.msra.mxu0 %v3363_v28 }
 0x185   :  { %3020 = vmatprep.subr.bf16.mxu0 %v3366_v41 }
 0x186   :  { %2173 = vmatmul.mubr.bf16.gmra.mxu1 %v3815_v3  ;;  %2242 = vmatmul.mubr.bf16.gmra.mxu0 %v3582_v46  ;;  %v3373_v46 = vld [vmem:[#allocation6 + $0x308] ss:$12 sps:$4 sm:$0xff]  }
 0x187   :  { %2249 = vmatprep.mubr.bf16.mxu0 %v3600_v5  ;;  %2182 = vmatprep.mubr.bf16.mxu1 %v3817_v18  ;;  %v4306_v5 = vld [vmem:[#allocation10_spill] sm:$0xff] }
 0x188   :  { %3021 = vmatpush3.bf16.msra.mxu0 %v3367_v35 }
 0x189   :  { %3022 = vmatprep.subr.bf16.mxu0 %v3368_v57 }
 0x18c   :  { %3023 = vmatpush3.bf16.msra.mxu0 %v3369_v49 }
 0x18d   :  { %3024 = vmatprep.subr.bf16.mxu0 %v3370_v21 }
 0x18e   :  { %2183 = vmatmul.mubr.bf16.gmra.mxu1 %v892_v39  ;;  %2250 = vmatmul.mubr.bf16.gmra.mxu0 %v3597_v1  ;;  %v4305_v1 = vld [vmem:[#allocation9_spill] sm:$0xff] }
 0x18f   :  { %2257 = vmatprep.mubr.bf16.mxu0 %v3602_v13  ;;  %2322 = vmatprep.mubr.bf16.mxu1 %v3615_v36  ;;  %v4307_v13 = vld [vmem:[#allocation11_spill] sm:$0xff] }
 0x190   :  { %3025 = vmatpush3.bf16.msra.mxu0 %v3371_v53 }
 0x191   :  { %3026 = vmatprep.subr.bf16.mxu0 %v3372_v11 }
 0x194   :  { %3027 = vmatpush3.bf16.msra.mxu0 %v3373_v46 }
 0x196   :  { %2258 = vmatmul.mubr.bf16.gmra.mxu0 %v3617_v37  ;;  %2323 = vmatmul.mubr.bf16.vlgmr.msra.gmra.mxu1 %v3619_v19 }
 0x197   :  { %2265 = vmatprep.mubr.bf16.mxu0 %v3623_v61  ;;  %2330 = vmatprep.mubr.bf16.mxu1 %v3639_v7 }
 0x19e   :  { %2266 = vmatmul.mubr.bf16.gmra.mxu0 %v3641_v12  ;;  %2331 = vmatmul.mubr.bf16.gmra.mxu1 %v3643_v15 }
 0x19f   :  { %2273 = vmatprep.mubr.bf16.mxu0 %v3647_v16  ;;  %2338 = vmatprep.mubr.bf16.mxu1 %v3663_v51 }
 0x1a6   :  { %2274 = vmatmul.mubr.bf16.gmra.mxu0 %v3665_v54  ;;  %2339 = vmatmul.mubr.bf16.gmra.mxu1 %v3667_v38 }
 0x1a7   :  { %2281 = vmatprep.mubr.bf16.mxu0 %v3671_v58  ;;  %2346 = vmatprep.mubr.bf16.mxu1 %v3687_v45 }
 0x1ae   :  { %2282 = vmatmul.mubr.bf16.gmra.mxu0 %v3691_v40  ;;  %2347 = vmatmul.mubr.bf16.gmra.mxu1 %v3693_v24 }
 0x1af   :  { %2354 = vmatprep.mubr.bf16.mxu1 %v3713_v23  ;;  %2419 = vmatprep.mubr.bf16.mxu0 %v3689_v2 }
 0x1b6   :  { %2355 = vmatmul.mubr.bf16.gmra.mxu1 %v3717_v26  ;;  %2420 = vmatmul.mubr.bf16.vlgmr.msra.gmra.mxu0 %v3709_v34 }
 0x1b7   :  { %2362 = vmatprep.mubr.bf16.mxu1 %v3737_v50  ;;  %2427 = vmatprep.mubr.bf16.mxu0 %v3715_v20 }
 0x1be   :  { %2363 = vmatmul.mubr.bf16.gmra.mxu1 %v3741_v6  ;;  %2428 = vmatmul.mubr.bf16.gmra.mxu0 %v4305_v1  ;;  %v3907_v1 = vshrl.u32 %v2534_v27, 7 }
 0x1bf   :  { %2370 = vmatprep.mubr.bf16.mxu1 %v3759_v42  ;;  %2435 = vmatprep.mubr.bf16.mxu0 %v4306_v5 }
 0x1c6   :  { %2371 = vmatmul.mubr.bf16.gmra.mxu1 %v3763_v47  ;;  %2436 = vmatmul.mubr.bf16.gmra.mxu0 %v3757_v63 }
 0x1c7   :  { %2378 = vmatprep.mubr.bf16.mxu1 %v3779_v60  ;;  %2443 = vmatprep.mubr.bf16.mxu0 %v4307_v13 }
 0x1ce   :  { %2379 = vmatmul.mubr.bf16.gmra.mxu1 %v3783_v32  ;;  %2444 = vmatmul.mubr.bf16.gmra.mxu0 %v3777_v10 }
 0x1cf   :  { %2451 = vmatprep.mubr.bf16.mxu0 %v3781_v22 }
 0x1d6   :  { %v1888_v36 = vpop.f32.mrf.mxu1  ;;  %2452 = vmatmul.mubr.bf16.gmra.mxu0 %v3794_v48 }
 0x1d7   :  { %2459 = vmatprep.mubr.bf16.mxu0 %v3796_v0 }
 0x1d8   :  { %v1890_v37 = vpop.f32.mrf.mxu1 }
 0x1da   :  { %v1892_v19 = vpop.f32.mrf.mxu1 }
 0x1dc   :  { %v1894_v61 = vpop.f32.mrf.mxu1 }
 0x1de   :  { %v1898_v7 = vpop.f32.mrf.mxu1  ;;  %2460 = vmatmul.mubr.bf16.gmra.mxu0 %v3805_v52 }
 0x1df   :  { %2467 = vmatprep.mubr.bf16.mxu0 %v3807_v55 }
 0x1e0   :  { %v1900_v12 = vpop.f32.mrf.mxu1 }
 0x1e2   :  { %v1902_v15 = vpop.f32.mrf.mxu1 }
 0x1e4   :  { %v1904_v16 = vpop.f32.mrf.mxu1 }
 0x1e6   :  { %v1908_v51 = vpop.f32.mrf.mxu1  ;;  %2468 = vmatmul.mubr.bf16.gmra.mxu0 %v3815_v3 }
 0x1e7   :  { %2475 = vmatprep.mubr.bf16.mxu0 %v3817_v18 }
 0x1e8   :  { %v1910_v54 = vpop.f32.mrf.mxu1 }
 0x1ea   :  { %v1912_v38 = vpop.f32.mrf.mxu1 }
 0x1ec   :  { %v1914_v58 = vpop.f32.mrf.mxu1 }
 0x1ee   :  { %v1918_v45 = vpop.f32.mrf.mxu1  ;;  %2476 = vmatmul.mubr.bf16.gmra.mxu0 %v892_v39 }
 0x1f0   :  { %v1920_v2 = vpop.f32.mrf.mxu1 }
 0x1f2   :  { %v1922_v40 = vpop.f32.mrf.mxu1 }
 0x1f4   :  { %v1924_v24 = vpop.f32.mrf.mxu1 }
 0x1f6   :  { %v1928_v34 = vpop.f32.mrf.mxu1  ;;  %v2001_v23 = vpop.f32.mrf.mxu0 }
 0x1f7   :  { %v2002_v20 = vadd.f32 %v2001_v23, %v1888_v36 }
 0x1f8   :  { %v1930_v26 = vpop.f32.mrf.mxu1  ;;  %v2003_v42 = vpop.f32.mrf.mxu0 }
 0x1f9   :  { %v2004_v50 = vadd.f32 %v2003_v42, %v1890_v37 }
 0x1fa   :  { %v1932_v6 = vpop.f32.mrf.mxu1  ;;  %v2005_v63 = vpop.f32.mrf.mxu0 }
 0x1fb   :  { %v2006_v32 = vadd.f32 %v2005_v63, %v1892_v19  ;;  %v2540_v19 = vsub.s32 1, %v3907_v1 }
 0x1fc   :  { %v3863_v47 = vpop.f32.mrf.mxu1  ;;  %v2007_v10 = vpop.f32.mrf.mxu0 }
 0x1fd   :  { %v2008_v60 = vadd.f32 %v2007_v10, %v1894_v61 }
 0x1fe   :  { %v3865_v22 = vpop.f32.mrf.mxu1  ;;  %v2011_v4 = vpop.f32.mrf.mxu0 }
 0x1ff   :  { %v3867_v48 = vadd.f32 %v2011_v4, %v1898_v7 }
 0x200   :  { %v3869_v0 = vpop.f32.mrf.mxu1  ;;  %v2013_v59 = vpop.f32.mrf.mxu0 }
 0x201   :  { %v3871_v9 = vadd.f32 %v2013_v59, %v1900_v12  ;;  %v2536_v12 = vsub.s32 0, %v3907_v1 }
 0x202   :  { %v3873_v44 = vpop.f32.mrf.mxu1  ;;  %v2015_v17 = vpop.f32.mrf.mxu0 }
 0x203   :  { %v3875_v30 = vadd.f32 %v2015_v17, %v1902_v15 }
 0x204   :  { %v3877_v14 = vpop.f32.mrf.mxu1  ;;  %v2017_v52 = vpop.f32.mrf.mxu0 }
 0x205   :  { %v3879_v55 = vadd.f32 %v2017_v52, %v1904_v16 }
 0x206   :  { %v3881_v25 = vpop.f32.mrf.mxu1  ;;  %v2021_v8 = vpop.f32.mrf.mxu0 }
 0x207   :  { %v3883_v56 = vadd.f32 %v2021_v8, %v1908_v51  ;;  %v3922_v51 = vld [vmem:[%s4297_s3] sm:$0x7] }
 0x208   :  { %v3885_v31 = vpop.f32.mrf.mxu1  ;;  %v2023_v43 = vpop.f32.mrf.mxu0 }
 0x209   :  { %v3887_v29 = vadd.f32 %v2023_v43, %v1910_v54 }
 0x20a   :  { %v3889_v62 = vpop.f32.mrf.mxu1  ;;  %v2025_v28 = vpop.f32.mrf.mxu0 }
 0x20b   :  { %v3891_v41 = vadd.f32 %v2025_v28, %v1912_v38 }
 0x20c   :  { %v3893_v3 = vpop.f32.mrf.mxu1  ;;  %v2027_v18 = vpop.f32.mrf.mxu0 }
 0x20d   :  { %v3895_v35 = vadd.f32 %v2027_v18, %v1914_v58 }
 0x20e   :  { %v3897_v57 = vpop.f32.mrf.mxu1  ;;  %v2031_v33 = vpop.f32.mrf.mxu0 }
 0x20f   :  { %v3899_v49 = vadd.f32 %v2031_v33, %v1918_v45 }
 0x210   :  { %v3901_v21 = vpop.f32.mrf.mxu1  ;;  %v2033_v39 = vpop.f32.mrf.mxu0 }
 0x211   :  { %v3903_v53 = vadd.f32 %v2033_v39, %v1920_v2  ;;  %v3927_v2 = vrot.slane %v3922_v51, %v2540_v19 }
 0x212   :  { %v3905_v11 = vpop.f32.mrf.mxu1  ;;  %v2035_v46 = vpop.f32.mrf.mxu0 }
 0x213   :  { %v3909_v5 = vadd.f32 %v2035_v46, %v1922_v40 }
 0x214   :  { %v3911_v13 = vpop.f32.mrf.mxu1  ;;  %v2037_v36 = vpop.f32.mrf.mxu0 }
 0x215   :  { %v3913_v37 = vadd.f32 %v2037_v36, %v1924_v24  ;;  %v3930_v24 = vrot.slane %v3922_v51, %v2536_v12 }
 0x216   :  { %v2041_v61 = vpop.f32.mrf.mxu0  ;;  %v2114_v7 = vpop.f32.mrf.mxu1 }
 0x217   :  { %v3917_v15 = vadd.f32 %v2041_v61, %v1928_v34  ;;  %v2115_v16 = vadd.f32 %v2114_v7, %v2002_v20 }
 0x218   :  { %v2043_v54 = vpop.f32.mrf.mxu0  ;;  %v2116_v38 = vpop.f32.mrf.mxu1 }
 0x219   :  { %v3924_v58 = vadd.f32 %v2043_v54, %v1930_v26  ;;  %v2117_v45 = vadd.f32 %v2116_v38, %v2004_v50  ;;  %v2484_v40 = vmax.f32 %v2115_v16, 0.0 }
 0x21a   :  { %v2045_v34 = vpop.f32.mrf.mxu0  ;;  %v2118_v23 = vpop.f32.mrf.mxu1 }
 0x21b   :  { %v2485_v20 = vmax.f32 %v2117_v45, 0.0  ;;  %v3932_v42 = vadd.f32 %v2045_v34, %v1932_v6  ;;  %v2119_v63 = vadd.f32 %v2118_v23, %v2006_v32  ;;  %v2549_v17 = vmul.f32 %v3930_v24, %v2484_v40 }
 0x21c   :  { %v2047_v10 = vpop.f32.mrf.mxu0  ;;  %v2120_v4 = vpop.f32.mrf.mxu1 }
 0x21d   :  { %v2550_v59 = vmul.f32 %v3927_v2, %v2485_v20  ;;  %v3936_v26 = vadd.f32 %v2047_v10, %v3863_v47  ;;  %v2121_v50 = vadd.f32 %v2120_v4, %v2008_v60  ;;  %v2487_v52 = vmax.f32 %v2119_v63, 0.0 }
 0x21e   :  { %v2051_v8 = vpop.f32.mrf.mxu0  ;;  %v2124_v43 = vpop.f32.mrf.mxu1 }
 0x21f   :  { %v2488_v28 = vmax.f32 %v2121_v50, 0.0  ;;  %v3940_v18 = vadd.f32 %v2051_v8, %v3865_v22  ;;  %v2125_v6 = vadd.f32 %v2124_v43, %v3867_v48  ;;  %v3943_v27 = vadd.f32 %v2550_v59, %v2549_v17 }
 0x220   :  { %v2053_v32 = vpop.f32.mrf.mxu0  ;;  %v2126_v33 = vpop.f32.mrf.mxu1  ;;  %v2552_v46 = vmul.f32 %v3930_v24, %v2487_v52 }
 0x221   :  { %v2553_v39 = vmul.f32 %v3927_v2, %v2488_v28  ;;  %v3947_v47 = vadd.f32 %v2053_v32, %v3869_v0  ;;  %v2127_v60 = vadd.f32 %v2126_v33, %v3871_v9  ;;  %v2490_v36 = vmax.f32 %v2125_v6, 0.0 }
 0x222   :  { %v2055_v19 = vpop.f32.mrf.mxu0  ;;  %v2128_v61 = vpop.f32.mrf.mxu1 }
 0x223   :  { %v2491_v22 = vmax.f32 %v2127_v60, 0.0  ;;  %v3952_v7 = vadd.f32 %v2055_v19, %v3873_v44  ;;  %v2129_v48 = vadd.f32 %v2128_v61, %v3875_v30  ;;  %v3955_v54 = vadd.f32 %v2553_v39, %v2552_v46 }
 0x224   :  { %v2057_v12 = vpop.f32.mrf.mxu0  ;;  %v2130_v16 = vpop.f32.mrf.mxu1  ;;  %v2555_v45 = vmul.f32 %v3930_v24, %v2490_v36 }
 0x225   :  { %v2556_v0 = vmul.f32 %v3927_v2, %v2491_v22  ;;  %v3959_v38 = vadd.f32 %v2057_v12, %v3877_v14  ;;  %v2131_v9 = vadd.f32 %v2130_v16, %v3879_v55  ;;  %v2493_v40 = vmax.f32 %v2129_v48, 0.0 }
 0x226   :  { %v2061_v34 = vpop.f32.mrf.mxu0  ;;  %v2134_v23 = vpop.f32.mrf.mxu1 }
 0x227   :  { %v2494_v44 = vmax.f32 %v2131_v9, 0.0  ;;  %v3964_v20 = vadd.f32 %v2061_v34, %v3881_v25  ;;  %v2135_v30 = vadd.f32 %v2134_v23, %v3883_v56  ;;  %v3967_v4 = vadd.f32 %v2556_v0, %v2555_v45 }
 0x228   :  { %v2063_v63 = vpop.f32.mrf.mxu0  ;;  %v2136_v10 = vpop.f32.mrf.mxu1  ;;  %v2558_v50 = vmul.f32 %v3930_v24, %v2493_v40 }
 0x229   :  { %v2559_v14 = vmul.f32 %v3927_v2, %v2494_v44  ;;  %v3971_v59 = vadd.f32 %v2063_v63, %v3885_v31  ;;  %v2137_v55 = vadd.f32 %v2136_v10, %v3887_v29  ;;  %v2496_v17 = vmax.f32 %v2135_v30, 0.0 }
 0x22a   :  { %v2065_v52 = vpop.f32.mrf.mxu0  ;;  %v2138_v8 = vpop.f32.mrf.mxu1 }
 0x22b   :  { %v2497_v25 = vmax.f32 %v2137_v55, 0.0  ;;  %v3976_v43 = vadd.f32 %v2065_v52, %v3889_v62  ;;  %v2139_v56 = vadd.f32 %v2138_v8, %v3891_v41  ;;  %v3979_v32 = vadd.f32 %v2559_v14, %v2558_v50 }
 0x22c   :  { %v2067_v28 = vpop.f32.mrf.mxu0  ;;  %v2140_v6 = vpop.f32.mrf.mxu1  ;;  %v2561_v39 = vmul.f32 %v3930_v24, %v2496_v17 }
 0x22d   :  { %v2562_v31 = vmul.f32 %v3927_v2, %v2497_v25  ;;  %v3983_v33 = vadd.f32 %v2067_v28, %v3893_v3  ;;  %v2141_v29 = vadd.f32 %v2140_v6, %v3895_v35  ;;  %v2499_v60 = vmax.f32 %v2139_v56, 0.0 }
 0x22e   :  { %v2071_v46 = vpop.f32.mrf.mxu0  ;;  %v2144_v36 = vpop.f32.mrf.mxu1 }
 0x22f   :  { %v2500_v62 = vmax.f32 %v2141_v29, 0.0  ;;  %v3988_v19 = vadd.f32 %v2071_v46, %v3897_v57  ;;  %v2145_v41 = vadd.f32 %v2144_v36, %v3899_v49  ;;  %v3991_v48 = vadd.f32 %v2562_v31, %v2561_v39 }
 0x230   :  { %v2073_v61 = vpop.f32.mrf.mxu0  ;;  %v2146_v22 = vpop.f32.mrf.mxu1  ;;  %v2564_v0 = vmul.f32 %v3930_v24, %v2499_v60 }
 0x231   :  { %v2565_v3 = vmul.f32 %v3927_v2, %v2500_v62  ;;  %v2502_v12 = vmax.f32 %v2145_v41, 0.0  ;;  %v3995_v35 = vadd.f32 %v2073_v61, %v3901_v21  ;;  %v2147_v16 = vadd.f32 %v2146_v22, %v3903_v53 }
 0x232   :  { %v2075_v9 = vpop.f32.mrf.mxu0  ;;  %v2148_v45 = vpop.f32.mrf.mxu1 }
 0x233   :  { %v2503_v57 = vmax.f32 %v2147_v16, 0.0  ;;  %v4000_v40 = vadd.f32 %v2075_v9, %v3905_v11  ;;  %v2149_v49 = vadd.f32 %v2148_v45, %v3909_v5  ;;  %v2567_v34 = vmul.f32 %v3930_v24, %v2502_v12 }
 0x234   :  { %v2077_v23 = vpop.f32.mrf.mxu0  ;;  %v2150_v44 = vpop.f32.mrf.mxu1  ;;  %v4004_v30 = vadd.f32 %v2565_v3, %v2564_v0 }
 0x235   :  { %v2568_v21 = vmul.f32 %v3927_v2, %v2503_v57  ;;  %v2505_v63 = vmax.f32 %v2149_v49, 0.0  ;;  %v4008_v53 = vadd.f32 %v2077_v23, %v3911_v13  ;;  %v2151_v10 = vadd.f32 %v2150_v44, %v3913_v37 }
 0x236   :  { %v2154_v14 = vpop.f32.mrf.mxu1  ;;  %v4011_v55 = vpop.f32.mrf.mxu0 }
 0x237   :  { %v2506_v11 = vmax.f32 %v2151_v10, 0.0  ;;  %v2155_v5 = vadd.f32 %v2154_v14, %v3917_v15  ;;  %v4014_v50 = vadd.f32 %v2568_v21, %v2567_v34  ;;  %v2570_v8 = vmul.f32 %v3930_v24, %v2505_v63 }
 0x238   :  { %v2156_v17 = vpop.f32.mrf.mxu1  ;;  %v4016_v52 = vpop.f32.mrf.mxu0 }
 0x239   :  { %v2571_v25 = vmul.f32 %v3927_v2, %v2506_v11  ;;  %v2508_v56 = vmax.f32 %v2155_v5, 0.0  ;;  %v2157_v13 = vadd.f32 %v2156_v17, %v3924_v58 }
 0x23a   :  { %v2158_v28 = vpop.f32.mrf.mxu1  ;;  %v4021_v37 = vpop.f32.mrf.mxu0 }
 0x23b   :  { %v2509_v6 = vmax.f32 %v2157_v13, 0.0  ;;  %v2159_v31 = vadd.f32 %v2158_v28, %v3932_v42  ;;  %v4024_v29 = vadd.f32 %v2571_v25, %v2570_v8  ;;  %v2573_v60 = vmul.f32 %v3930_v24, %v2508_v56 }
 0x23c   :  { %v2160_v15 = vpop.f32.mrf.mxu1  ;;  %v4026_v39 = vpop.f32.mrf.mxu0 }
 0x23d   :  { %v2574_v46 = vmul.f32 %v3927_v2, %v2509_v6  ;;  %v2511_v36 = vmax.f32 %v2159_v31, 0.0  ;;  %v2161_v62 = vadd.f32 %v2160_v15, %v3936_v26 }
 0x23e   :  { %v2164_v41 = vpop.f32.mrf.mxu1  ;;  %v4031_v58 = vpop.f32.mrf.mxu0 }
 0x23f   :  { %v2512_v61 = vmax.f32 %v2161_v62, 0.0  ;;  %v2165_v22 = vadd.f32 %v2164_v41, %v3940_v18  ;;  %v4034_v3 = vadd.f32 %v2574_v46, %v2573_v60  ;;  %v2576_v16 = vmul.f32 %v3930_v24, %v2511_v36 }
 0x240   :  { %v2166_v42 = vpop.f32.mrf.mxu1  ;;  %v4036_v12 = vpop.f32.mrf.mxu0 }
 0x241   :  { %v2577_v0 = vmul.f32 %v3927_v2, %v2512_v61  ;;  %v2514_v9 = vmax.f32 %v2165_v22, 0.0  ;;  %v2167_v45 = vadd.f32 %v2166_v42, %v3947_v47 }
 0x242   :  { %v2168_v57 = vpop.f32.mrf.mxu1  ;;  %v4041_v26 = vpop.f32.mrf.mxu0 }
 0x243   :  { %v2515_v49 = vmax.f32 %v2167_v45, 0.0  ;;  %v2169_v34 = vadd.f32 %v2168_v57, %v3952_v7  ;;  %v4044_v23 = vadd.f32 %v2577_v0, %v2576_v16  ;;  %v2579_v21 = vmul.f32 %v3930_v24, %v2514_v9 }
 0x244   :  { %v2170_v18 = vpop.f32.mrf.mxu1  ;;  %v4046_v44 = vpop.f32.mrf.mxu0 }
 0x245   :  { %4308 = vst [vmem:[#allocation9_spill] sm:$0xff] %v4044_v23  ;;  %v2580_v63 = vmul.f32 %v3927_v2, %v2515_v49  ;;  %v2517_v10 = vmax.f32 %v2169_v34, 0.0  ;;  %v2171_v14 = vadd.f32 %v2170_v18, %v3959_v38 }
 0x246   :  { %v2174_v11 = vpop.f32.mrf.mxu1  ;;  %v4051_v47 = vpop.f32.mrf.mxu0 }
 0x247   :  { %v2518_v5 = vmax.f32 %v2171_v14, 0.0  ;;  %v2175_v17 = vadd.f32 %v2174_v11, %v3964_v20  ;;  %v4054_v8 = vadd.f32 %v2580_v63, %v2579_v21  ;;  %v2582_v56 = vmul.f32 %v3930_v24, %v2517_v10 }
 0x248   :  { %v2176_v7 = vpop.f32.mrf.mxu1  ;;  %v4056_v25 = vpop.f32.mrf.mxu0 }
 0x249   :  { %4309 = vst [vmem:[#allocation10_spill] sm:$0xff] %v4054_v8  ;;  %v2583_v13 = vmul.f32 %v3927_v2, %v2518_v5  ;;  %v2520_v28 = vmax.f32 %v2175_v17, 0.0  ;;  %v2177_v6 = vadd.f32 %v2176_v7, %v3971_v59 }
 0x24a   :  { %v2178_v31 = vpop.f32.mrf.mxu1  ;;  %v4061_v38 = vpop.f32.mrf.mxu0 }
 0x24b   :  { %v2521_v15 = vmax.f32 %v2177_v6, 0.0  ;;  %v2179_v60 = vadd.f32 %v2178_v31, %v3976_v43  ;;  %v4064_v46 = vadd.f32 %v2583_v13, %v2582_v56  ;;  %v2585_v62 = vmul.f32 %v3930_v24, %v2520_v28 }
 0x24c   :  { %v2180_v20 = vpop.f32.mrf.mxu1  ;;  %v4066_v36 = vpop.f32.mrf.mxu0 }
 0x24d   :  { %4310 = vst [vmem:[#allocation11_spill] sm:$0xff] %v4064_v46  ;;  %v2586_v41 = vmul.f32 %v3927_v2, %v2521_v15  ;;  %v2523_v61 = vmax.f32 %v2179_v60, 0.0  ;;  %v2181_v22 = vadd.f32 %v2180_v20, %v3983_v33 }
 0x24e   :  { %v2184_v42 = vpop.f32.mrf.mxu1  ;;  %v4071_v59 = vpop.f32.mrf.mxu0 }
 0x24f   :  { %v2524_v16 = vmax.f32 %v2181_v22, 0.0  ;;  %v2185_v0 = vadd.f32 %v2184_v42, %v3988_v19  ;;  %v4074_v9 = vadd.f32 %v2586_v41, %v2585_v62  ;;  %v2588_v57 = vmul.f32 %v3930_v24, %v2523_v61 }
 0x250   :  { %v2186_v43 = vpop.f32.mrf.mxu1  ;;  %v4076_v45 = vpop.f32.mrf.mxu0 }
 0x251   :  { %4311 = vst [vmem:[#allocation12_spill] sm:$0xff] %v4074_v9  ;;  %v2589_v49 = vmul.f32 %v3927_v2, %v2524_v16  ;;  %v2526_v34 = vmax.f32 %v2185_v0, 0.0  ;;  %v2187_v18 = vadd.f32 %v2186_v43, %v3995_v35 }
 0x252   :  { %v2188_v21 = vpop.f32.mrf.mxu1  ;;  %v4081_v33 = vpop.f32.mrf.mxu0 }
 0x253   :  { %v2527_v63 = vmax.f32 %v2187_v18, 0.0  ;;  %v2189_v10 = vadd.f32 %v2188_v21, %v4000_v40  ;;  %v4084_v14 = vadd.f32 %v2589_v49, %v2588_v57  ;;  %v2591_v5 = vmul.f32 %v3930_v24, %v2526_v34 }
 0x254   :  { %v2190_v19 = vpop.f32.mrf.mxu1  ;;  %v4086_v11 = vpop.f32.mrf.mxu0 }
 0x255   :  { %4312 = vst [vmem:[#allocation13_spill] sm:$0xff] %v4084_v14  ;;  %v2592_v17 = vmul.f32 %v3927_v2, %v2527_v63  ;;  %v2529_v7 = vmax.f32 %v2189_v10, 0.0  ;;  %v2191_v56 = vadd.f32 %v2190_v19, %v4008_v53 }
 0x256   :  { %v4091_v13 = vpop.f32.mrf.mxu0  ;;  %v2964_v35 = vpop.f32.mrf.mxu1 }
 0x257   :  { %v2530_v28 = vmax.f32 %v2191_v56, 0.0  ;;  %v4093_v6 = vadd.f32 %v2592_v17, %v2591_v5  ;;  %v2594_v15 = vmul.f32 %v3930_v24, %v2529_v7 }
 0x258   :  { %v4095_v31 = vpop.f32.mrf.mxu0  ;;  %v2965_v40 = vpop.f32.mrf.mxu1 }
 0x259   :  { %4313 = vst [vmem:[#allocation14_spill] sm:$0xff] %v4093_v6  ;;  %v2595_v60 = vmul.f32 %v3927_v2, %v2530_v28  ;;  %v2966_v14 = vadd.f32 %v2965_v40, %v2964_v35  ;;  %v2905_v35 = vadd.f32 %v4026_v39, %v4021_v37 }
 0x25a   :  { %v4099_v20 = vpop.f32.mrf.mxu0  ;;  %v2967_v62 = vpop.f32.mrf.mxu1 }
 0x25b   :  { %v4101_v41 = vadd.f32 %v2595_v60, %v2594_v15 }
 0x25c   :  { %v4103_v61 = vpop.f32.mrf.mxu0  ;;  %v2968_v53 = vpop.f32.mrf.mxu1 }
 0x25d   :  { %4314 = vst [vmem:[#allocation15_spill] sm:$0xff] %v4101_v41 }
 0x25e   :  { %v4105_v22 = vpop.f32.mrf.mxu0  ;;  %v2970_v42 = vpop.f32.mrf.mxu1 }
 0x260   :  { %v4107_v16 = vpop.f32.mrf.mxu0  ;;  %v2971_v0 = vpop.f32.mrf.mxu1 }
 0x262   :  { %v4109_v43 = vpop.f32.mrf.mxu0  ;;  %v2973_v57 = vpop.f32.mrf.mxu1 }
 0x263   :  { %4315 = vst [vmem:[#allocation16_spill] sm:$0xff] %v4109_v43 }
 0x264   :  { %v4111_v24 = vpop.f32.mrf.mxu0  ;;  %v2974_v2 = vpop.f32.mrf.mxu1 }
 0x265   :  { %4316 = vst [vmem:[#allocation17_spill] sm:$0xff] %v4111_v24  ;;  %v2972_v24 = vadd.f32 %v2971_v0, %v2970_v42  ;;  %v2975_v39 = vadd.f32 %v2974_v2, %v2973_v57 }
 0x266   :  { %v4113_v49 = vpop.f32.mrf.mxu0  ;;  %v2976_v34 = vpop.f32.mrf.mxu1 }
 0x267   :  { %4317 = vst [vmem:[#allocation18_spill] sm:$0xff] %v4113_v49 }
 0x268   :  { %v4115_v18 = vpop.f32.mrf.mxu0  ;;  %v2977_v21 = vpop.f32.mrf.mxu1 }
 0x269   :  { %4318 = vst [vmem:[#allocation19_spill] sm:$0xff] %v4115_v18 }
 0x26a   :  { %v4117_v63 = vpop.f32.mrf.mxu0  ;;  %v2979_v10 = vpop.f32.mrf.mxu1 }
 0x26b   :  { %4319 = vst [vmem:[#allocation20_spill] sm:$0xff] %v4117_v63 }
 0x26c   :  { %v4119_v19 = vpop.f32.mrf.mxu0  ;;  %v2980_v5 = vpop.f32.mrf.mxu1 }
 0x26d   :  { %4320 = vst [vmem:[#allocation21_spill] sm:$0xff] %v4119_v19  ;;  %v2544_v19 = vsub.s32 2, %v3907_v1 }
 0x26e   :  { %v4121_v17 = vpop.f32.mrf.mxu0  ;;  %v4123_v7 = vpop.f32.mrf.mxu1 }
 0x26f   :  { %4321 = vst [vmem:[#allocation22_spill] sm:$0xff] %v4121_v17  ;;  %v2902_v17 = vadd.f32 %v4016_v52, %v4011_v55  ;;  %v4149_v23 = vrot.slane %v3922_v51, %v2544_v19 }
 0x270   :  { %v4125_v56 = vpop.f32.mrf.mxu0  ;;  %v4127_v28 = vpop.f32.mrf.mxu1 }
 0x271   :  { %4322 = vst [vmem:[#allocation23_spill] sm:$0xff] %v4125_v56  ;;  %v2325_v8 = vadd.f32 %v2966_v14, %v2902_v17  ;;  %v2908_v14 = vadd.f32 %v4036_v12, %v4031_v58 }
 0x272   :  { %v4129_v15 = vpop.f32.mrf.mxu0  ;;  %v4131_v60 = vpop.f32.mrf.mxu1 }
 0x273   :  { %4323 = vst [vmem:[#allocation24_spill] sm:$0xff] %v4129_v15  ;;  %v2969_v15 = vadd.f32 %v2968_v53, %v2967_v62  ;;  %v2333_v17 = vadd.f32 %v2972_v24, %v2908_v14 }
 0x274   :  { %v4133_v41 = vpop.f32.mrf.mxu0  ;;  %v4135_v6 = vpop.f32.mrf.mxu1 }
 0x275   :  { %4324 = vst [vmem:[#allocation25_spill] sm:$0xff] %v4133_v41  ;;  %v2328_v52 = vadd.f32 %v2969_v15, %v2905_v35 }
 0x276   :  { %v4137_v9 = vpop.f32.mrf.mxu1  ;;  %v3028_v46 = vpop.f32.mrf.mxu0 }
 0x278   :  { %v4142_v56 = vpop.f32.mrf.mxu1  ;;  %v3029_v63 = vpop.f32.mrf.mxu0 }
 0x279   :  { %v3030_v18 = vadd.f32 %v3029_v63, %v3028_v46 }
 0x27a   :  { %v4144_v49 = vpop.f32.mrf.mxu1  ;;  %v3031_v41 = vpop.f32.mrf.mxu0 }
 0x27b   :  { %v2422_v40 = vadd.f32 %v3030_v18, %v2325_v8 }
 0x27c   :  { %v3032_v55 = vpop.f32.mrf.mxu0  ;;  %v4153_v62 = vpop.f32.mrf.mxu1 }
 0x27d   :  { %v2486_v1 = vmax.f32 %v2422_v40, 0.0  ;;  %v3033_v43 = vadd.f32 %v3032_v55, %v3031_v41  ;;  %v2911_v41 = vadd.f32 %v4046_v44, %v4041_v26 }
 0x27e   :  { %v3034_v46 = vpop.f32.mrf.mxu0  ;;  %v4157_v0 = vpop.f32.mrf.mxu1 }
 0x27f   :  { %v2425_v53 = vadd.f32 %v3033_v43, %v2328_v52  ;;  %v2551_v63 = vmul.f32 %v4149_v23, %v2486_v1  ;;  %v2978_v43 = vadd.f32 %v2977_v21, %v2976_v34  ;;  %v2336_v15 = vadd.f32 %v2975_v39, %v2911_v41 }
 0x280   :  { %v3035_v37 = vpop.f32.mrf.mxu0  ;;  %v4165_v2 = vpop.f32.mrf.mxu1  ;;  %v2981_v1 = vadd.f32 %v2980_v5, %v2979_v10 }
 0x281   :  { %v2489_v8 = vmax.f32 %v2425_v53, 0.0  ;;  %v3036_v51 = vadd.f32 %v3035_v37, %v3034_v46  ;;  %v2598_v42 = vadd.f32 %v3943_v27, %v2551_v63  ;;  %v2914_v27 = vadd.f32 %v4056_v25, %v4051_v47 }
 0x282   :  { %v3037_v18 = vpop.f32.mrf.mxu0  ;;  %v4169_v46 = vpop.f32.mrf.mxu1  ;;  %v2917_v47 = vadd.f32 %v4066_v36, %v4061_v38  ;;  %v2984_v63 = vadd.f32 %v4127_v28, %v4123_v7  ;;  %v2987_v7 = vadd.f32 %v4135_v6, %v4131_v60 }
 0x283   :  { %v2430_v58 = vadd.f32 %v3036_v51, %v2333_v17  ;;  %2599 = vadd.xlane.f32.xlu0 %v2598_v42  ;;  %v2554_v12 = vmul.f32 %v4149_v23, %v2489_v8  ;;  %v2341_v44 = vadd.f32 %v2978_v43, %v2914_v27 }
 0x284   :  { %v3038_v19 = vpop.f32.mrf.mxu0  ;;  %v2344_v37 = vadd.f32 %v2981_v1, %v2917_v47  ;;  %v2998_v8 = vpop.f32.mrf.mxu1 }
 0x285   :  { %v2492_v24 = vmax.f32 %v2430_v58, 0.0  ;;  %v3039_v35 = vadd.f32 %v3038_v19, %v3037_v18  ;;  %v2602_v57 = vadd.f32 %v3955_v54, %v2554_v12  ;;  %v2990_v19 = vadd.f32 %v4142_v56, %v4137_v9 }
 0x286   :  { %v3040_v40 = vpop.f32.mrf.mxu0  ;;  %v3000_v12 = vpop.f32.mrf.mxu1  ;;  %v2993_v9 = vadd.f32 %v4153_v62, %v4144_v49 }
 0x287   :  { %v2433_v55 = vadd.f32 %v3039_v35, %v2336_v15  ;;  %2603 = vadd.xlane.f32.xlu0 %v2602_v57  ;;  %v2557_v26 = vmul.f32 %v4149_v23, %v2492_v24 }
 0x288   :  { %v3041_v52 = vpop.f32.mrf.mxu0  ;;  %v3001_v57 = vpop.f32.mrf.mxu1 }
 0x289   :  { %v2495_v34 = vmax.f32 %v2433_v55, 0.0  ;;  %v3042_v21 = vadd.f32 %v3041_v52, %v3040_v40  ;;  %v2606_v14 = vadd.f32 %v3967_v4, %v2557_v26  ;;  %v2920_v4 = vadd.f32 %v4076_v45, %v4071_v59 }
 0x28a   :  { %v3043_v54 = vpop.f32.mrf.mxu0  ;;  %v2923_v59 = vadd.f32 %v4086_v11, %v4081_v33  ;;  %v3003_v52 = vpop.f32.mrf.mxu1 }
 0x28b   :  { %v2438_v25 = vadd.f32 %v3042_v21, %v2341_v44  ;;  %2607 = vadd.xlane.f32.xlu1 %v2606_v14  ;;  %v2560_v53 = vmul.f32 %v4149_v23, %v2495_v34  ;;  %v2349_v36 = vadd.f32 %v2984_v63, %v2920_v4  ;;  %v2996_v34 = vadd.f32 %v4165_v2, %v4157_v0 }
 0x28c   :  { %v3044_v17 = vpop.f32.mrf.mxu0  ;;  %v2352_v24 = vadd.f32 %v2987_v7, %v2923_v59  ;;  %v3004_v47 = vpop.f32.mrf.mxu1  ;;  %v4327_v7 = vld [vmem:[#allocation9_spill] sm:$0xff] }
 0x28d   :  { %v2498_v10 = vmax.f32 %v2438_v25, 0.0  ;;  %v3045_v5 = vadd.f32 %v3044_v17, %v3043_v54  ;;  %v2610_v39 = vadd.f32 %v3979_v32, %v2560_v53  ;;  %v2999_v17 = vadd.f32 %v2998_v8, %v4169_v46  ;;  %v4328_v8 = vld [vmem:[#allocation18_spill] sm:$0xff] }
 0x28e   :  { %v3046_v51 = vpop.f32.mrf.mxu0 }
 0x28f   :  { %v2441_v42 = vadd.f32 %v3045_v5, %v2344_v37  ;;  %2611 = vadd.xlane.f32.xlu1 %v2610_v39  ;;  %v2563_v38 = vmul.f32 %v4149_v23, %v2498_v10  ;;  %v3006_v10 = vpop.f32.mrf.mxu1  ;;  %v4326_v39 = vld [vmem:[#allocation17_spill] sm:$0xff] }
 0x290   :  { %v3047_v18 = vpop.f32.mrf.mxu0 }
 0x291   :  { %v2501_v28 = vmax.f32 %v2441_v42, 0.0  ;;  %v3048_v41 = vadd.f32 %v3047_v18, %v3046_v51  ;;  %v2614_v58 = vadd.f32 %v3991_v48, %v2563_v38  ;;  %v2926_v48 = vadd.f32 %v4095_v31, %v4091_v13 }
 0x292   :  { %v3049_v32 = vpop.f32.mrf.mxu0  ;;  %v2929_v13 = vadd.f32 %v4103_v61, %v4099_v20  ;;  %v3002_v51 = vadd.f32 %v3001_v57, %v3000_v12  ;;  %v4332_v57 = vld [vmem:[#allocation21_spill] sm:$0xff] }
 0x293   :  { %v2446_v45 = vadd.f32 %v3048_v41, %v2349_v36  ;;  %2615 = vadd.xlane.f32.xlu0 %v2614_v58  ;;  %v2566_v43 = vmul.f32 %v4149_v23, %v2501_v28  ;;  %v2357_v11 = vadd.f32 %v2990_v19, %v2926_v48  ;;  %v4329_v28 = vld [vmem:[#allocation19_spill] sm:$0xff]  ;;  %v3005_v19 = vadd.f32 %v3004_v47, %v3003_v52  ;;  %v4331_v48 = vld [vmem:[#allocation20_spill] sm:$0xff] }
 0x294   :  { %v3050_v15 = vpop.f32.mrf.mxu0  ;;  %v2360_v14 = vadd.f32 %v2993_v9, %v2929_v13  ;;  %v2938_v41 = vadd.f32 %v4329_v28, %v4328_v8  ;;  %v4335_v13 = vld [vmem:[#allocation23_spill] sm:$0xff] }
 0x295   :  { %v2504_v35 = vmax.f32 %v2446_v45, 0.0  ;;  %v3051_v6 = vadd.f32 %v3050_v15, %v3049_v32  ;;  %v2618_v60 = vadd.f32 %v4004_v30, %v2566_v43 }
 0x296   :  { %v3052_v27 = vpop.f32.mrf.mxu0  ;;  %v2373_v45 = vadd.f32 %v3002_v51, %v2938_v41 }
 0x297   :  { %v2449_v40 = vadd.f32 %v3051_v6, %v2352_v24  ;;  %2619 = vadd.xlane.f32.xlu1 %v2618_v60  ;;  %v2569_v33 = vmul.f32 %v4149_v23, %v2504_v35  ;;  %v4330_v24 = vld [vmem:[#allocation10_spill] sm:$0xff] }
 0x298   :  { %v3053_v55 = vpop.f32.mrf.mxu0 }
 0x299   :  { %v2507_v56 = vmax.f32 %v2449_v40, 0.0  ;;  %v3054_v26 = vadd.f32 %v3053_v55, %v3052_v27  ;;  %v2622_v44 = vadd.f32 %v4014_v50, %v2569_v33  ;;  %v2932_v50 = vadd.f32 %v4107_v16, %v4105_v22 }
 0x29a   :  { %v3055_v30 = vpop.f32.mrf.mxu0  ;;  %v2941_v27 = vadd.f32 %v4332_v57, %v4331_v48 }
 0x29b   :  { %v2454_v31 = vadd.f32 %v3054_v26, %v2357_v11  ;;  %2623 = vadd.xlane.f32.xlu0 %v2622_v44  ;;  %v2572_v1 = vmul.f32 %v4149_v23, %v2507_v56  ;;  %v2365_v61 = vadd.f32 %v2996_v34, %v2932_v50  ;;  %v4333_v44 = vld [vmem:[#allocation11_spill] sm:$0xff] }
 0x29c   :  { %v3056_v21 = vpop.f32.mrf.mxu0  ;;  %v2376_v9 = vadd.f32 %v3005_v19, %v2941_v27 }
 0x29d   :  { %v2510_v54 = vmax.f32 %v2454_v31, 0.0  ;;  %v3057_v49 = vadd.f32 %v3056_v21, %v3055_v30  ;;  %v2626_v62 = vadd.f32 %v4024_v29, %v2572_v1  ;;  %v4325_v29 = vld [vmem:[#allocation16_spill] sm:$0xff]  ;;  %v4334_v30 = vld [vmem:[#allocation22_spill] sm:$0xff] }
 0x29e   :  { %v3058_v25 = vpop.f32.mrf.mxu0  ;;  %v2935_v4 = vadd.f32 %v4326_v39, %v4325_v29  ;;  %v2944_v31 = vadd.f32 %v4335_v13, %v4334_v30  ;;  %v4339_v39 = vld [vmem:[#allocation13_spill] sm:$0xff] }
 0x29f   :  { %v2457_v53 = vadd.f32 %v3057_v49, %v2360_v14  ;;  %2627 = vadd.xlane.f32.xlu1 %v2626_v62  ;;  %v2575_v20 = vmul.f32 %v4149_v23, %v2510_v54 }
 0x2a0   :  { %v3059_v63 = vpop.f32.mrf.mxu0  ;;  %v2368_v38 = vadd.f32 %v2999_v17, %v2935_v4 }
 0x2a1   :  { %v2513_v0 = vmax.f32 %v2457_v53, 0.0  ;;  %v3060_v2 = vadd.f32 %v3059_v63, %v3058_v25  ;;  %v2630_v37 = vadd.f32 %v4034_v3, %v2575_v20  ;;  %v3007_v3 = vpop.f32.mrf.mxu1  ;;  %v4336_v25 = vld [vmem:[#allocation12_spill] sm:$0xff]  ;;  %v4338_v63 = vld [vmem:[#allocation25_spill] sm:$0xff] }
 0x2a2   :  { %v3061_v5 = vpop.f32.mrf.mxu0  ;;  %v3008_v11 = vadd.f32 %v3007_v3, %v3006_v10 }
 0x2a3   :  { %v2462_v22 = vadd.f32 %v3060_v2, %v2365_v61  ;;  %2631 = vadd.xlane.f32.xlu0 %v2630_v37  ;;  %v2578_v16 = vmul.f32 %v4149_v23, %v2513_v0  ;;  %v3009_v6 = vpop.f32.mrf.mxu1  ;;  %v4337_v61 = vld [vmem:[#allocation24_spill] sm:$0xff] }
 0x2a4   :  { %v3062_v42 = vpop.f32.mrf.mxu0  ;;  %v2381_v54 = vadd.f32 %v3008_v11, %v2944_v31  ;;  %v2947_v17 = vadd.f32 %v4338_v63, %v4337_v61 }
 0x2a5   :  { %v2516_v36 = vmax.f32 %v2462_v22, 0.0  ;;  %v3063_v18 = vadd.f32 %v3062_v42, %v3061_v5  ;;  %v2634_v46 = vadd.f32 %v4327_v7, %v2578_v16  ;;  %v3010_v1 = vpop.f32.mrf.mxu1  ;;  %v4340_v42 = vld [vmem:[#allocation14_spill] sm:$0xff] }
 0x2a6   :  { %v3064_v58 = vpop.f32.mrf.mxu0  ;;  %v3011_v62 = vadd.f32 %v3010_v1, %v3009_v6 }
 0x2a7   :  { %v2465_v32 = vadd.f32 %v3063_v18, %v2368_v38  ;;  %2635 = vadd.xlane.f32.xlu1 %v2634_v46  ;;  %v2581_v59 = vmul.f32 %v4149_v23, %v2516_v36  ;;  %v4341_v18 = vld [vmem:[#allocation15_spill] sm:$0xff] }
 0x2a8   :  { %v3065_v43 = vpop.f32.mrf.mxu0  ;;  %v2384_v10 = vadd.f32 %v3011_v62, %v2947_v17 }
 0x2a9   :  { %v2519_v15 = vmax.f32 %v2465_v32, 0.0  ;;  %v3066_v12 = vadd.f32 %v3065_v43, %v3064_v58  ;;  %v2638_v35 = vadd.f32 %v4330_v24, %v2581_v59 }
 0x2aa   :  { %v3067_v60 = vpop.f32.mrf.mxu0 }
 0x2ab   :  { %v2470_v40 = vadd.f32 %v3066_v12, %v2373_v45  ;;  %2639 = vadd.xlane.f32.xlu0 %v2638_v35  ;;  %v2584_v33 = vmul.f32 %v4149_v23, %v2519_v15 }
 0x2ac   :  { %v3068_v55 = vpop.f32.mrf.mxu0 }
 0x2ad   :  { %v2522_v56 = vmax.f32 %v2470_v40, 0.0  ;;  %v3069_v26 = vadd.f32 %v3068_v55, %v3067_v60  ;;  %v2642_v52 = vadd.f32 %v4333_v44, %v2584_v33 }
 0x2ae   :  { %v3070_v34 = vpop.f32.mrf.mxu0 }
 0x2af   :  { %v2473_v21 = vadd.f32 %v3069_v26, %v2376_v9  ;;  %2643 = vadd.xlane.f32.xlu1 %v2642_v52  ;;  %v2587_v14 = vmul.f32 %v4149_v23, %v2522_v56 }
 0x2b0   :  { %v3071_v49 = vpop.f32.mrf.mxu0 }
 0x2b1   :  { %v2525_v50 = vmax.f32 %v2473_v21, 0.0  ;;  %v3072_v47 = vadd.f32 %v3071_v49, %v3070_v34  ;;  %v2646_v53 = vadd.f32 %v4336_v25, %v2587_v14 }
 0x2b2   :  { %v3073_v20 = vpop.f32.mrf.mxu0 }
 0x2b3   :  { %v2478_v0 = vadd.f32 %v3072_v47, %v2381_v54  ;;  %2647 = vadd.xlane.f32.xlu0 %v2646_v53  ;;  %v2590_v2 = vmul.f32 %v4149_v23, %v2525_v50 }
 0x2b4   :  { %v3074_v37 = vpop.f32.mrf.mxu0 }
 0x2b5   :  { %v2528_v5 = vmax.f32 %v2478_v0, 0.0  ;;  %v3075_v29 = vadd.f32 %v3074_v37, %v3073_v20  ;;  %v2650_v4 = vadd.f32 %v4339_v39, %v2590_v2 }
 0x2b7   :  { %v2481_v22 = vadd.f32 %v3075_v29, %v2384_v10  ;;  %2651 = vadd.xlane.f32.xlu1 %v2650_v4  ;;  %v2593_v16 = vmul.f32 %v4149_v23, %v2528_v5 }
 0x2b9   :  { %v2531_v51 = vmax.f32 %v2481_v22, 0.0  ;;  %v2654_v38 = vadd.f32 %v4340_v42, %v2593_v16 }
 0x2bb   :  { %2655 = vadd.xlane.f32.xlu0 %v2654_v38  ;;  %v2596_v36 = vmul.f32 %v4149_v23, %v2531_v51 }
 0x2bd   :  { %v2658_v7 = vadd.f32 %v4341_v18, %v2596_v36 }
 0x2bf   :  { %2659 = vadd.xlane.f32.xlu1 %v2658_v7 }
 0x30c   :  { %v2600_v46 = vpop.xlane.xlu0 %2599 }
 0x30d   :  { %2662 = vst.msk [vmem:[%s4298_s4] sm:$0xff] %vm2661_vm0, %v2600_v46 }
 0x310   :  { %v2604_v8 = vpop.xlane.xlu0 %2603 }
 0x311   :  { %2663 = vst.msk [vmem:[%s4298_s4 + $0x8] sm:$0xff] %vm2661_vm0, %v2604_v8 }
 0x314   :  { %v2608_v28 = vpop.xlane.xlu1 %2607 }
 0x315   :  { %2664 = vst.msk [vmem:[%s4298_s4 + $0x10] sm:$0xff] %vm2661_vm0, %v2608_v28 }
 0x318   :  { %v2612_v23 = vpop.xlane.xlu1 %2611 }
 0x319   :  { %2665 = vst.msk [vmem:[%s4298_s4 + $0x18] sm:$0xff] %vm2661_vm0, %v2612_v23 }
 0x31c   :  { %v2616_v41 = vpop.xlane.xlu0 %2615 }
 0x31d   :  { %2666 = vst.msk [vmem:[%s4298_s4 + $0x20] sm:$0xff] %vm2661_vm0, %v2616_v41 }
 0x320   :  { %v2620_v3 = vpop.xlane.xlu1 %2619 }
 0x321   :  { %2667 = vst.msk [vmem:[%s4298_s4 + $0x28] sm:$0xff] %vm2661_vm0, %v2620_v3 }
 0x324   :  { %v2624_v58 = vpop.xlane.xlu0 %2623 }
 0x325   :  { %2668 = vst.msk [vmem:[%s4298_s4 + $0x30] sm:$0xff] %vm2661_vm0, %v2624_v58 }
 0x328   :  { %v2628_v32 = vpop.xlane.xlu1 %2627 }
 0x329   :  { %2669 = vst.msk [vmem:[%s4298_s4 + $0x38] sm:$0xff] %vm2661_vm0, %v2628_v32 }
 0x32c   :  { %v2632_v59 = vpop.xlane.xlu0 %2631 }
 0x32d   :  { %2670 = vst.msk [vmem:[%s4298_s4 + $0x40] sm:$0xff] %vm2661_vm0, %v2632_v59 }
 0x330   :  { %v2636_v45 = vpop.xlane.xlu1 %2635 }
 0x331   :  { %2671 = vst.msk [vmem:[%s4298_s4 + $0x48] sm:$0xff] %vm2661_vm0, %v2636_v45 }
 0x334   :  { %v2640_v43 = vpop.xlane.xlu0 %2639 }
 0x335   :  { %2672 = vst.msk [vmem:[%s4298_s4 + $0x50] sm:$0xff] %vm2661_vm0, %v2640_v43 }
 0x338   :  { %v2644_v19 = vpop.xlane.xlu1 %2643 }
 0x339   :  { %2673 = vst.msk [vmem:[%s4298_s4 + $0x58] sm:$0xff] %vm2661_vm0, %v2644_v19 }
 0x33c   :  { %v2648_v15 = vpop.xlane.xlu0 %2647 }
 0x33d   :  { %2674 = vst.msk [vmem:[%s4298_s4 + $0x60] sm:$0xff] %vm2661_vm0, %v2648_v15 }
 0x340   :  { %v2652_v12 = vpop.xlane.xlu1 %2651 }
 0x341   :  { %2675 = vst.msk [vmem:[%s4298_s4 + $0x68] sm:$0xff] %vm2661_vm0, %v2652_v12 }
 0x344   :  { %v2656_v24 = vpop.xlane.xlu0 %2655 }
 0x345   :  { %2676 = vst.msk [vmem:[%s4298_s4 + $0x70] sm:$0xff] %vm2661_vm0, %v2656_v24 }
 0x348   :  { %v2660_v35 = vpop.xlane.xlu1 %2659 }
 0x349   :  { %2677 = vst.msk [vmem:[%s4298_s4 + $0x78] sm:$0xff] %vm2661_vm0, %v2660_v35 }
 0x34a   :  { %2682 = vsyncpa [#allocation3], 1 }
 0x34b   :  { %2683 = vsyncpa [#allocation5], 1 }

</bundles_post_ra>
